<compile_context>
chip_gen: v7x
topology: tpu7x:2x2x1
jax: 0.10.0
libtpu: 0.0.40
codegen_flags: <defaults>
</compile_context>

<pallas_src>
import jax
import jax.numpy as jnp
import numpy as np
from jax.experimental import pallas as pl
from jax.experimental.pallas import tpu as pltpu


def _round_up(x, m):
    return ((x + m - 1) // m) * m


def _leaky_relu(x, slope=0.2):
    return jnp.where(x > 0, x, slope * x)


def discriminator_kernel(x_ref, w1_ref, b1_ref, w2_ref, b2_ref, w3_ref, b3_ref,
                         o_ref):
    # x: (TB, D) f32 ; w1: (D, 512) bf16 ; w2: (512, 256) bf16
    # b1: (1, 512) f32 ; b2: (1, 256) f32 ; w3: (1, 256) f32 ; b3: (1,) f32 SMEM
    # o: (TB, 1) f32
    # In-kernel cast to bf16 (VPU) so the wrapper never writes a bf16 copy.
    x = x_ref[...].astype(jnp.bfloat16)
    # Layer 1: MXU matmul, f32 accumulation.
    h = jnp.dot(x, w1_ref[...], preferred_element_type=jnp.float32)
    h = _leaky_relu(h + b1_ref[...])
    # Layer 2: cast activations back to bf16 for the MXU, accumulate in f32.
    h = jnp.dot(h.astype(jnp.bfloat16), w2_ref[...],
                preferred_element_type=jnp.float32)
    h = _leaky_relu(h + b2_ref[...])
    # Layer 3: N=1 output -> VPU multiply + lane reduction instead of a
    # degenerate MXU matmul; bias is an SMEM scalar.
    logit = jnp.sum(h * w3_ref[...], axis=-1, keepdims=True) + b3_ref[0]
    # Exact sigmoid: exp on the EUP, exact divide (keeps prob strictly in [0,1]).
    o_ref[...] = 1.0 / (1.0 + jnp.exp(-logit))


def discriminator_forward(img, params, *, tb=None):
    """img: (B, C, H, W) float32 (NCHW, like PyTorch).  Returns (B, 1) f32."""
    B = img.shape[0]
    D = int(np.prod(img.shape[1:]))
    w1, b1, w2, b2, w3, b3 = params
    assert w1.shape[0] == D, (w1.shape, D)

    # Flatten row-major (identical ordering to torch .view(B, -1)).  The
    # f32->bf16 cast happens inside the kernel; no extra HBM copy here.
    x = img.reshape(B, D)

    # Batch tile selection:
    #  * large batches: 256/512-row tiles (multiple of 256 fills the 256-wide
    #    MXU on v6e/v7x) while keeping plenty of grid steps.
    #  * moderate batches: split into >=2 tiles so the "parallel" batch axis
    #    can shard across v7x's two TensorCores.
    #  * tiny batches: just round up to the 8-row sublane granule.
    if tb is None:
        if B >= 512:
            tb = 512 if B >= 4096 else 256
        elif B >= 16:
            tb = max(8, _round_up(pl.cdiv(B, 2), 8))
        else:
            tb = max(8, _round_up(B, 8))

    # No padding of x: partial last block is fine (rows are independent and the
    # output DMA is clipped to B rows).
    grid = (pl.cdiv(B, tb),)

    out = pl.pallas_call(
        discriminator_kernel,
        out_shape=jax.ShapeDtypeStruct((B, 1), jnp.float32),
        grid=grid,
        in_specs=[
            pl.BlockSpec((tb, D), lambda i: (i, 0)),        # x: tiled over batch
            pl.BlockSpec(w1.shape, lambda i: (0, 0)),       # weights/biases stay
            pl.BlockSpec(b1.shape, lambda i: (0, 0)),       # VMEM-resident across
            pl.BlockSpec(w2.shape, lambda i: (0, 0)),       # grid iterations
            pl.BlockSpec(b2.shape, lambda i: (0, 0)),
            pl.BlockSpec(w3.shape, lambda i: (0, 0)),
            pl.BlockSpec(memory_space=pltpu.MemorySpace.SMEM),  # b3 scalar
        ],
        out_specs=pl.BlockSpec((tb, 1), lambda i: (i, 0)),  # narrow (tb,1) store
        compiler_params=pltpu.CompilerParams(
            dimension_semantics=("parallel",),   # shard batch across v7x TCs
            vmem_limit_bytes=32 << 20,
        ),
    )(x, w1, b1, w2, b2, w3, b3)

    return out


def init_params(key, in_dim):
    """Deterministic init mirroring nn.Linear's U(-1/sqrt(fan_in), 1/sqrt(fan_in)).

    w1/w2 stored (in_features, out_features) in bf16 (MXU-native); w3 stored as
    a (1, 256) f32 row for the VPU reduction; biases f32, b3 as a (1,) scalar."""
    dims = [(in_dim, 512), (512, 256), (256, 1)]
    raw = []
    for fan_in, fan_out in dims:
        key, kw, kb = jax.random.split(key, 3)
        bound = 1.0 / np.sqrt(fan_in)
        w = jax.random.uniform(kw, (fan_in, fan_out), jnp.float32, -bound, bound)
        b = jax.random.uniform(kb, (fan_out,), jnp.float32, -bound, bound)
        raw.append((w, b))
    (w1, b1), (w2, b2), (w3, b3) = raw
    return (
        w1.astype(jnp.bfloat16), b1.reshape(1, 512),
        w2.astype(jnp.bfloat16), b2.reshape(1, 256),
        w3.reshape(1, 256),      b3.reshape(1,),
    )


def _reference(img, params):
    """Pure-JAX reference mirroring the kernel math (bf16 matmuls, f32 accum)."""
    w1, b1, w2, b2, w3, b3 = params
    x = img.reshape(img.shape[0], -1).astype(jnp.bfloat16)
    h = jnp.dot(x, w1, preferred_element_type=jnp.float32) + b1
    h = jnp.where(h > 0, h, 0.2 * h)
    h = jnp.dot(h.astype(jnp.bfloat16), w2, preferred_element_type=jnp.float32) + b2
    h = jnp.where(h > 0, h, 0.2 * h)
    logit = jnp.sum(h * w3, axis=-1, keepdims=True) + b3[0]
    return jax.nn.sigmoid(logit)


if __name__ == "__main__":
    # OPT.image_number_of_channels = 4, OPT.image_size = 16  (small synthetic cfg)
    B, C, H, W = 2, 4, 16, 16
    D = C * H * W  # 1024 = prod(input_image_shape)

    key = jax.random.PRNGKey(0)
    key, k_img = jax.random.split(key)
    img = jax.random.normal(k_img, (B, C, H, W), dtype=jnp.float32)
    params = init_params(key, D)

    out = discriminator_forward(img, params)
    out = jax.block_until_ready(out)

    ref = _reference(img, params)
    assert out.shape == (B, 1), out.shape
    np.testing.assert_allclose(np.asarray(out), np.asarray(ref),
                               rtol=5e-3, atol=5e-3)

    print("KERNEL_OK")
</pallas_src>

<mosaic_0001>
module attributes {stable_mosaic.version = 11 : i64} {
  func.func @discriminator_kernel(%arg0: i32, %arg1: memref<8x1024xf32, #tpu.memory_space<vmem>>, %arg2: memref<1024x512xbf16, #tpu.memory_space<vmem>>, %arg3: memref<1x512xf32, #tpu.memory_space<vmem>>, %arg4: memref<512x256xbf16, #tpu.memory_space<vmem>>, %arg5: memref<1x256xf32, #tpu.memory_space<vmem>>, %arg6: memref<1x256xf32, #tpu.memory_space<vmem>>, %arg7: memref<1xf32, #tpu.memory_space<smem>>, %arg8: memref<8x1xf32, #tpu.memory_space<vmem>>) attributes {dimension_semantics = [#tpu.dimension_semantics<parallel>], iteration_bounds = array<i64: 1>, scalar_prefetch = 0 : i64, scratch_operands = 0 : i64, tpu.core_type = #tpu.core_type<tc>, window_params = [{transform_indices = @transform_0, window_bounds = array<i64: 8, 1024>}, {pipeline_mode = #tpu.pipeline_mode<synchronous>, transform_indices = @transform_1, window_bounds = array<i64: 1024, 512>}, {pipeline_mode = #tpu.pipeline_mode<synchronous>, transform_indices = @transform_2, window_bounds = array<i64: 1, 512>}, {pipeline_mode = #tpu.pipeline_mode<synchronous>, transform_indices = @transform_3, window_bounds = array<i64: 512, 256>}, {pipeline_mode = #tpu.pipeline_mode<synchronous>, transform_indices = @transform_4, window_bounds = array<i64: 1, 256>}, {pipeline_mode = #tpu.pipeline_mode<synchronous>, transform_indices = @transform_5, window_bounds = array<i64: 1, 256>}, {transform_indices = @transform_6, window_bounds = array<i64: 1>}, {transform_indices = @transform_7, window_bounds = array<i64: 8, 1>}]} {
    %c0 = arith.constant 0 : index
    %c0_0 = arith.constant 0 : index
    %0 = vector.load %arg1[%c0, %c0_0] : memref<8x1024xf32, #tpu.memory_space<vmem>>, vector<8x1024xf32>
    %1 = arith.truncf %0 : vector<8x1024xf32> to vector<8x1024xbf16>
    %c0_1 = arith.constant 0 : index
    %c0_2 = arith.constant 0 : index
    %2 = vector.load %arg2[%c0_1, %c0_2] : memref<1024x512xbf16, #tpu.memory_space<vmem>>, vector<1024x512xbf16>
    %cst = arith.constant dense<0.000000e+00> : vector<8x512xf32>
    %3 = tpu.matmul %1, %2, %cst {dimension_numbers = #tpu.dot_dimension_numbers<[1], [0], [0], [1], [0, 0, 1, 1], [], []>} : vector<8x1024xbf16>, vector<1024x512xbf16>, vector<8x512xf32> -> vector<8x512xf32>
    %c0_3 = arith.constant 0 : index
    %c0_4 = arith.constant 0 : index
    %4 = vector.load %arg3[%c0_3, %c0_4] : memref<1x512xf32, #tpu.memory_space<vmem>>, vector<1x512xf32>
    %5 = vector.broadcast %4 : vector<1x512xf32> to vector<8x512xf32>
    %6 = arith.addf %3, %5 : vector<8x512xf32>
    %cst_5 = arith.constant 0.000000e+00 : f32
    %7 = vector.broadcast %cst_5 : f32 to vector<8x512xf32>
    %8 = arith.cmpf ogt, %6, %7 : vector<8x512xf32>
    %cst_6 = arith.constant 2.000000e-01 : f32
    %9 = vector.broadcast %cst_6 : f32 to vector<8x512xf32>
    %10 = arith.mulf %9, %6 : vector<8x512xf32>
    %11 = arith.select %8, %6, %10 : vector<8x512xi1>, vector<8x512xf32>
    %12 = arith.truncf %11 : vector<8x512xf32> to vector<8x512xbf16>
    %c0_7 = arith.constant 0 : index
    %c0_8 = arith.constant 0 : index
    %13 = vector.load %arg4[%c0_7, %c0_8] : memref<512x256xbf16, #tpu.memory_space<vmem>>, vector<512x256xbf16>
    %cst_9 = arith.constant dense<0.000000e+00> : vector<8x256xf32>
    %14 = tpu.matmul %12, %13, %cst_9 {dimension_numbers = #tpu.dot_dimension_numbers<[1], [0], [0], [1], [0, 0, 1, 1], [], []>} : vector<8x512xbf16>, vector<512x256xbf16>, vector<8x256xf32> -> vector<8x256xf32>
    %c0_10 = arith.constant 0 : index
    %c0_11 = arith.constant 0 : index
    %15 = vector.load %arg5[%c0_10, %c0_11] : memref<1x256xf32, #tpu.memory_space<vmem>>, vector<1x256xf32>
    %16 = vector.broadcast %15 : vector<1x256xf32> to vector<8x256xf32>
    %17 = arith.addf %14, %16 : vector<8x256xf32>
    %cst_12 = arith.constant 0.000000e+00 : f32
    %18 = vector.broadcast %cst_12 : f32 to vector<8x256xf32>
    %19 = arith.cmpf ogt, %17, %18 : vector<8x256xf32>
    %cst_13 = arith.constant 2.000000e-01 : f32
    %20 = vector.broadcast %cst_13 : f32 to vector<8x256xf32>
    %21 = arith.mulf %20, %17 : vector<8x256xf32>
    %22 = arith.select %19, %17, %21 : vector<8x256xi1>, vector<8x256xf32>
    %c0_14 = arith.constant 0 : index
    %c0_15 = arith.constant 0 : index
    %23 = vector.load %arg6[%c0_14, %c0_15] : memref<1x256xf32, #tpu.memory_space<vmem>>, vector<1x256xf32>
    %24 = vector.broadcast %23 : vector<1x256xf32> to vector<8x256xf32>
    %25 = arith.mulf %22, %24 : vector<8x256xf32>
    %cst_16 = arith.constant dense<0.000000e+00> : vector<8xf32>
    %26 = vector.multi_reduction <add>, %25, %cst_16 [1] : vector<8x256xf32> to vector<8xf32>
    %27 = vector.shape_cast %26 : vector<8xf32> to vector<8x1xf32>
    %c0_17 = arith.constant 0 : index
    %28 = memref.load %arg7[%c0_17] : memref<1xf32, #tpu.memory_space<smem>>
    %29 = vector.broadcast %28 : f32 to vector<8x1xf32>
    %30 = arith.addf %27, %29 : vector<8x1xf32>
    %cst_18 = arith.constant 0.000000e+00 : f32
    %31 = vector.broadcast %cst_18 : f32 to vector<8x1xf32>
    %32 = arith.subf %31, %30 : vector<8x1xf32>
    %33 = math.exp %32 : vector<8x1xf32>
    %cst_19 = arith.constant 1.000000e+00 : f32
    %34 = vector.broadcast %cst_19 : f32 to vector<8x1xf32>
    %35 = arith.addf %34, %33 : vector<8x1xf32>
    %cst_20 = arith.constant 1.000000e+00 : f32
    %36 = vector.broadcast %cst_20 : f32 to vector<8x1xf32>
    %37 = arith.divf %36, %35 : vector<8x1xf32>
    %c0_21 = arith.constant 0 : index
    %c0_22 = arith.constant 0 : index
    %38 = vector.load %arg8[%c0_21, %c0_22] : memref<8x1xf32, #tpu.memory_space<vmem>>, vector<8x1xf32>
    tpu.vector_store %arg8[%c0_21, %c0_22], %37 {strides = array<i32>} : memref<8x1xf32, #tpu.memory_space<vmem>>, vector<8x1xf32>,
    return
  }
  func.func @transform_0(%arg0: i32) -> (i32, i32) {
    %c0_i32 = arith.constant 0 : i32
    %c0_i32_0 = arith.constant 0 : i32
    return %arg0, %c0_i32 : i32, i32
  }
  func.func @transform_1(%arg0: i32) -> (i32, i32) {
    %c0_i32 = arith.constant 0 : i32
    %c0_i32_0 = arith.constant 0 : i32
    %c0_i32_1 = arith.constant 0 : i32
    return %c0_i32, %c0_i32_0 : i32, i32
  }
  func.func @transform_2(%arg0: i32) -> (i32, i32) {
    %c0_i32 = arith.constant 0 : i32
    %c0_i32_0 = arith.constant 0 : i32
    %c0_i32_1 = arith.constant 0 : i32
    return %c0_i32, %c0_i32_0 : i32, i32
  }
  func.func @transform_3(%arg0: i32) -> (i32, i32) {
    %c0_i32 = arith.constant 0 : i32
    %c0_i32_0 = arith.constant 0 : i32
    %c0_i32_1 = arith.constant 0 : i32
    return %c0_i32, %c0_i32_0 : i32, i32
  }
  func.func @transform_4(%arg0: i32) -> (i32, i32) {
    %c0_i32 = arith.constant 0 : i32
    %c0_i32_0 = arith.constant 0 : i32
    %c0_i32_1 = arith.constant 0 : i32
    return %c0_i32, %c0_i32_0 : i32, i32
  }
  func.func @transform_5(%arg0: i32) -> (i32, i32) {
    %c0_i32 = arith.constant 0 : i32
    %c0_i32_0 = arith.constant 0 : i32
    %c0_i32_1 = arith.constant 0 : i32
    return %c0_i32, %c0_i32_0 : i32, i32
  }
  func.func @transform_6(%arg0: i32) -> i32 {
    %c0_i32 = arith.constant 0 : i32
    %c0_i32_0 = arith.constant 0 : i32
    return %c0_i32 : i32
  }
  func.func @transform_7(%arg0: i32) -> (i32, i32) {
    %c0_i32 = arith.constant 0 : i32
    %c0_i32_0 = arith.constant 0 : i32
    return %arg0, %c0_i32 : i32, i32
  }
}

</mosaic_0001>

<bundles_post_ra>
// kernel: tpu_custom_call.1
= control target key start
LH: loop header
LB: loop body
LE: loop exit
PB: predicated region body
PF: predicated region fallthrough
CT: control target
= control target key end

     0   :  { %13 = vsyncpa [#allocation4], 0  ;;  %s3737_s0 = inlined_call_operand.hbm [shape: f32[2,1024], index: 0, kind: input, shape index: {}]   ;;  %s3738_s1 = inlined_call_operand.hbm [shape: bf16[1024,512], index: 1, kind: input, shape index: {}]   ;;  %s3739_s2 = inlined_call_operand.vmem [shape: f32[1,512], index: 2, kind: input, shape index: {}]   ;;  %s3740_s3 = inlined_call_operand.hbm [shape: bf16[512,256], index: 3, kind: input, shape index: {}]   ;;  %s3741_s4 = inlined_call_operand.vmem [shape: f32[1,256], index: 4, kind: input, shape index: {}]   ;;  %s3742_s5 = inlined_call_operand.vmem [shape: f32[1,256], index: 5, kind: input, shape index: {}]   ;;  %s3743_s6 = inlined_call_operand.<no memory space> [shape: f32[1], index: 6, kind: input, shape index: {}]   ;;  %s3744_s7 = inlined_call_operand.vmem [shape: f32[2,1], index: 7, kind: output, shape index: {}]  }
   0x1   :  { %14 = vsyncpa [#allocation6], 0 }
   0x2   :  { %19 = vsyncadd [#allocation4], 768  ;;  %s3553_s24 = smov [#allocation5]   ;;  %s3554_s26 = smov [#allocation3]  }
   0x3   :  { %s32_s25 = sshll.u32 %s3553_s24, 4  ;;  %s20_s27 = sshll.u32 %s3554_s26, 4  ;;  %s33_s25 = int_to_ptr.vmem [resolvable:$true] %s32_s25  ;;  %s3601_s27 = int_to_ptr.vmem [resolvable:$true] %s20_s27 }
   0x4   :  { %s3483_s30 = scalar_lea.hbm %s3738_s1, 32768 }
   0x5   :  { %p3484_p0 = scmp.ne.s32.totalorder %s3738_s1, %s3483_s30  ;;  %p3487_p1 = scmp.lt.u32.totalorder %s3483_s30, %s3738_s1 }
   0x7   :  { %p3489_p2 = pnand %p3487_p1, %p3484_p0 }
   0x9   :  { %3492 = shalt.err (!%p3489_p2)
}
   0xa   :  { %s3493_s12 = scalar_lea.vmem %s33_s25, 32768  ;;  %p3498_p4 = scmp.lt.s32.totalorder %s33_s25, %s33_s25 }
   0xb   :  { %p3494_p3 = scmp.ne.s32.totalorder %s33_s25, %s3493_s12  ;;  %p3499_p5 = scmp.lt.s32.totalorder %s3493_s12, %s3493_s12 }
   0xd   :  { %p3500_p6 = por %p3499_p5, %p3498_p4 }
   0xf   :  { %p3501_p7 = pnand %p3500_p6, %p3494_p3 }
  0x11   :  { %3504 = shalt.err (!%p3501_p7)
}
  0x12   :  { %s3555_s13 = smov 256   ;;  %s3556_s14 = smov 16  }
  0x13   :  { %38 = dma.hbm_to_vmem [thread:$0]  %s3738_s1, 32768, %s33_s25, [#allocation6], %s3555_s13, %s3555_s13, %s3556_s14  }
  0x14   :  { %s3505_s19 = scalar_lea.hbm %s3737_s0, 256 }
  0x15   :  { %p3506_p8 = scmp.ne.s32.totalorder %s3737_s0, %s3505_s19  ;;  %p3509_p9 = scmp.lt.u32.totalorder %s3505_s19, %s3737_s0 }
  0x17   :  { %p3511_p10 = pnand %p3509_p9, %p3506_p8 }
  0x19   :  { %3514 = shalt.err (!%p3511_p10)
}
  0x1a   :  { %s3515_s24 = scalar_lea.vmem %s3601_s27, 256  ;;  %s3519_s1 = scalar_lea.vmem %s3601_s27, 1024 }
  0x1b   :  { %p3516_p11 = scmp.ne.s32.totalorder %s3601_s27, %s3515_s24  ;;  %p3520_p12 = scmp.lt.s32.totalorder %s3601_s27, %s3601_s27 }
  0x1c   :  { %p3521_p13 = scmp.lt.s32.totalorder %s3519_s1, %s3515_s24 }
  0x1e   :  { %p3522_p0 = por %p3521_p13, %p3520_p12 }
  0x20   :  { %p3523_p1 = pnand %p3522_p0, %p3516_p11 }
  0x22   :  { %3526 = shalt.err (!%p3523_p1)
}
  0x23   :  { %26 = dma.hbm_to_vmem [thread:$0]  %s3737_s0, 256, %s3601_s27, [#allocation4], %s3555_s13, %s3555_s13, %s3556_s14  }
  0x24   :  { %s3557_s28 = smov [#allocation7]   ;;  %s3527_s9 = scalar_lea.hbm %s3740_s3, 8192 }
  0x25   :  { %s46_s29 = sshll.u32 %s3557_s28, 4  ;;  %p3528_p2 = scmp.ne.s32.totalorder %s3740_s3, %s3527_s9  ;;  %s47_s29 = int_to_ptr.vmem [resolvable:$true] %s46_s29 }
  0x26   :  { %p3531_p3 = scmp.lt.u32.totalorder %s3527_s9, %s3740_s3 }
  0x28   :  { %p3533_p4 = pnand %p3531_p3, %p3528_p2 }
  0x2a   :  { %3536 = shalt.err (!%p3533_p4)
}
  0x2b   :  { %s3537_s16 = scalar_lea.vmem %s47_s29, 8192  ;;  %p3542_p6 = scmp.lt.s32.totalorder %s47_s29, %s47_s29 }
  0x2c   :  { %p3538_p5 = scmp.ne.s32.totalorder %s47_s29, %s3537_s16  ;;  %p3543_p7 = scmp.lt.s32.totalorder %s3537_s16, %s3537_s16 }
  0x2e   :  { %p3544_p8 = por %p3543_p7, %p3542_p6 }
  0x30   :  { %p3545_p9 = pnand %p3544_p8, %p3538_p5 }
  0x32   :  { %3548 = shalt.err (!%p3545_p9)
}
  0x33   :  { %s3558_s0 = smov 128   ;;  %s3559_s27 = smov 8  }
  0x34   :  { %52 = dma.hbm_to_vmem [thread:$0]  %s3740_s3, 8192, %s47_s29, [#allocation6], %s3558_s0, %s3558_s0, %s3559_s27  }
  0x35   :  { %3549 = dma.done.wait [#allocation4], 1024  }
  0x36   :  { %3550 = vsyncadd [#allocation4], 4294966272 }
  0x37   :  { %3551 = dma.done.wait [#allocation6], 40960  }
  0x38   :  { %3552 = vsyncadd [#allocation6], 4294926336  ;;  %v2987_v0 = vld [vmem:[#allocation5 + $0x4] ss:$16 sps:$4 sm:$0xff]   ;;  %v2991_v2 = vld [vmem:[#allocation5] ss:$16 sps:$4 sm:$0xff]   ;;  %v91_v40 = vlaneseq }
  0x39   :  { %v2989_v1 = vld [vmem:[#allocation5 + $0x204] ss:$16 sps:$4 sm:$0xff]   ;;  %1730 = vmatprep.subr.bf16.mxu1 %v2987_v0  ;;  %v2992_v3 = vld [vmem:[#allocation5 + $0x200] ss:$16 sps:$4 sm:$0xff]   ;;  %v3560_v38 = vmov 1983009808  }
  0x3a   :  { %1771 = vmatprep.subr.bf16.mxu0 %v2989_v1  ;;  %v2993_v4 = vld [vmem:[#allocation5 + $0x24] ss:$16 sps:$4 sm:$0xff]   ;;  %1731 = vmatpush1.bf16.msra.mxu1 %v2991_v2  ;;  %v2997_v6 = vld [vmem:[#allocation5 + $0x20] ss:$16 sps:$4 sm:$0xff]   ;;  %v89_v39 = vunpack.c.l.s4 %v3560_v38  ;;  %v3645_v46 = vshrl.u32 %v91_v40, 7  ;;  %vm2584_vm6 = vcmask 7168  }
  0x3b   :  { %1772 = vmatpush1.bf16.msra.mxu0 %v2992_v3  ;;  %v2995_v5 = vld [vmem:[#allocation5 + $0x224] ss:$16 sps:$4 sm:$0xff]   ;;  %1732 = vmatprep.subr.bf16.mxu1 %v2993_v4  ;;  %v2998_v7 = vld [vmem:[#allocation5 + $0x220] ss:$16 sps:$4 sm:$0xff]  }
  0x3c   :  { %1773 = vmatprep.subr.bf16.mxu0 %v2995_v5  ;;  %v2999_v8 = vld [vmem:[#allocation5 + $0x44] ss:$16 sps:$4 sm:$0xff]   ;;  %v3003_v10 = vld [vmem:[#allocation5 + $0x40] ss:$16 sps:$4 sm:$0xff]   ;;  %v90_v45 = vunpack.c.0.s8 %v89_v39  ;;  %v3118_v39 = vld [vmem:[#allocation5 + $0x8c] ss:$16 sps:$4 sm:$0xff]  }
  0x3d   :  { %v3001_v9 = vld [vmem:[#allocation5 + $0x244] ss:$16 sps:$4 sm:$0xff]   ;;  %v3004_v11 = vld [vmem:[#allocation5 + $0x240] ss:$16 sps:$4 sm:$0xff]  }
  0x3e   :  { %1733 = vmatpush1.bf16.msra.mxu1 %v2997_v6  ;;  %v3005_v12 = vld [vmem:[#allocation5 + $0x64] ss:$16 sps:$4 sm:$0xff]   ;;  %v3009_v14 = vld [vmem:[#allocation5 + $0x60] ss:$16 sps:$4 sm:$0xff]   ;;  %v3648_v53 = vsub.s32 %v90_v45, %v3645_v46  ;;  %v3122_v45 = vld [vmem:[#allocation5 + $0xa8] ss:$16 sps:$4 sm:$0xff]  }
  0x3f   :  { %1774 = vmatpush1.bf16.msra.mxu0 %v2998_v7  ;;  %1734 = vmatprep.subr.bf16.mxu1 %v2999_v8  ;;  %v3007_v13 = vld [vmem:[#allocation5 + $0x264] ss:$16 sps:$4 sm:$0xff]   ;;  %v3010_v15 = vld [vmem:[#allocation5 + $0x260] ss:$16 sps:$4 sm:$0xff]  }
  0x40   :  { %1775 = vmatprep.subr.bf16.mxu0 %v3001_v9  ;;  %v3011_v16 = vld [vmem:[#allocation5 + $0x84] ss:$16 sps:$4 sm:$0xff]   ;;  %v3015_v18 = vld [vmem:[#allocation5 + $0x80] ss:$16 sps:$4 sm:$0xff]  }
  0x41   :  { %v3013_v17 = vld [vmem:[#allocation5 + $0x284] ss:$16 sps:$4 sm:$0xff]   ;;  %v3016_v19 = vld [vmem:[#allocation5 + $0x280] ss:$16 sps:$4 sm:$0xff]  }
  0x42   :  { %1735 = vmatpush1.bf16.msra.mxu1 %v3003_v10  ;;  %v3017_v20 = vld [vmem:[#allocation5 + $0xa4] ss:$16 sps:$4 sm:$0xff]   ;;  %v3021_v22 = vld [vmem:[#allocation5 + $0xa0] ss:$16 sps:$4 sm:$0xff]  }
  0x43   :  { %1776 = vmatpush1.bf16.msra.mxu0 %v3004_v11  ;;  %1736 = vmatprep.subr.bf16.mxu1 %v3005_v12  ;;  %v3019_v21 = vld [vmem:[#allocation5 + $0x2a4] ss:$16 sps:$4 sm:$0xff]   ;;  %v3022_v23 = vld [vmem:[#allocation5 + $0x2a0] ss:$16 sps:$4 sm:$0xff]  }
  0x44   :  { %1777 = vmatprep.subr.bf16.mxu0 %v3007_v13  ;;  %v3023_v24 = vld [vmem:[#allocation5 + $0xc4] ss:$16 sps:$4 sm:$0xff]   ;;  %v3027_v26 = vld [vmem:[#allocation5 + $0xc0] ss:$16 sps:$4 sm:$0xff]  }
  0x45   :  { %v3025_v25 = vld [vmem:[#allocation5 + $0x2c4] ss:$16 sps:$4 sm:$0xff]   ;;  %v3028_v27 = vld [vmem:[#allocation5 + $0x2c0] ss:$16 sps:$4 sm:$0xff]  }
  0x46   :  { %1737 = vmatpush1.bf16.msra.mxu1 %v3009_v14  ;;  %v3029_v28 = vld [vmem:[#allocation5 + $0xe4] ss:$16 sps:$4 sm:$0xff]   ;;  %v3033_v30 = vld [vmem:[#allocation5 + $0xe0] ss:$16 sps:$4 sm:$0xff]  }
  0x47   :  { %1778 = vmatpush1.bf16.msra.mxu0 %v3010_v15  ;;  %1738 = vmatprep.subr.bf16.mxu1 %v3011_v16  ;;  %v3031_v29 = vld [vmem:[#allocation5 + $0x2e4] ss:$16 sps:$4 sm:$0xff]   ;;  %v3034_v31 = vld [vmem:[#allocation5 + $0x2e0] ss:$16 sps:$4 sm:$0xff]  }
  0x48   :  { %1779 = vmatprep.subr.bf16.mxu0 %v3013_v17  ;;  %v3035_v32 = vld [vmem:[#allocation5 + $0x104] ss:$16 sps:$4 sm:$0xff]   ;;  %v3039_v34 = vld [vmem:[#allocation5 + $0x100] ss:$16 sps:$4 sm:$0xff]  }
  0x49   :  { %v3037_v33 = vld [vmem:[#allocation5 + $0x304] ss:$16 sps:$4 sm:$0xff]   ;;  %v3040_v35 = vld [vmem:[#allocation5 + $0x300] ss:$16 sps:$4 sm:$0xff]  }
  0x4a   :  { %1739 = vmatpush1.bf16.msra.mxu1 %v3015_v18  ;;  %v3041_v36 = vld [vmem:[#allocation5 + $0x124] ss:$16 sps:$4 sm:$0xff]   ;;  %v3045_v41 = vld [vmem:[#allocation5 + $0x120] ss:$16 sps:$4 sm:$0xff]  }
  0x4b   :  { %1780 = vmatpush1.bf16.msra.mxu0 %v3016_v19  ;;  %1740 = vmatprep.subr.bf16.mxu1 %v3017_v20  ;;  %v3043_v37 = vld [vmem:[#allocation5 + $0x324] ss:$16 sps:$4 sm:$0xff]   ;;  %v3046_v42 = vld [vmem:[#allocation5 + $0x320] ss:$16 sps:$4 sm:$0xff]  }
  0x4c   :  { %1781 = vmatprep.subr.bf16.mxu0 %v3019_v21  ;;  %v3047_v43 = vld [vmem:[#allocation5 + $0x144] ss:$16 sps:$4 sm:$0xff]   ;;  %v3051_v47 = vld [vmem:[#allocation5 + $0x140] ss:$16 sps:$4 sm:$0xff]   ;;  %v3094_v21 = vld [vmem:[#allocation5 + $0xc] ss:$16 sps:$4 sm:$0xff]  }
  0x4d   :  { %v3049_v44 = vld [vmem:[#allocation5 + $0x344] ss:$16 sps:$4 sm:$0xff]   ;;  %v3052_v48 = vld [vmem:[#allocation5 + $0x340] ss:$16 sps:$4 sm:$0xff]  }
  0x4e   :  { %1741 = vmatpush1.bf16.msra.mxu1 %v3021_v22  ;;  %v3053_v49 = vld [vmem:[#allocation5 + $0x164] ss:$16 sps:$4 sm:$0xff]   ;;  %v3057_v51 = vld [vmem:[#allocation5 + $0x160] ss:$16 sps:$4 sm:$0xff]  }
  0x4f   :  { %1782 = vmatpush1.bf16.msra.mxu0 %v3022_v23  ;;  %1742 = vmatprep.subr.bf16.mxu1 %v3023_v24  ;;  %v3055_v50 = vld [vmem:[#allocation5 + $0x364] ss:$16 sps:$4 sm:$0xff]   ;;  %v3058_v52 = vld [vmem:[#allocation5 + $0x360] ss:$16 sps:$4 sm:$0xff]   ;;  %v3092_v24 = vld [vmem:[#allocation5 + $0x8] ss:$16 sps:$4 sm:$0xff]  }
  0x50   :  { %1783 = vmatprep.subr.bf16.mxu0 %v3025_v25  ;;  %v3059_v54 = vld [vmem:[#allocation5 + $0x184] ss:$16 sps:$4 sm:$0xff]   ;;  %v3083_v56 = vld [vmem:[#allocation3] ss:$16 sps:$4 sm:$0xff]  }
  0x51   :  { %v3061_v55 = vld [vmem:[#allocation5 + $0x384] ss:$16 sps:$4 sm:$0xff]   ;;  %v3085_v57 = vld [vmem:[#allocation3 + $0x20] ss:$16 sps:$4 sm:$0xff]   ;;  %v94_v60 = vrot.slane %v3083_v56, %v3648_v53 }
  0x52   :  { %1743 = vmatpush1.bf16.msra.mxu1 %v3027_v26  ;;  %v3087_v58 = vld [vmem:[#allocation3 + $0x4] ss:$16 sps:$4 sm:$0xff]   ;;  %v108_v61 = vrot.slane %v3085_v57, %v3648_v53  ;;  %v3063_v63 = vld [vmem:[#allocation5 + $0x180] ss:$16 sps:$4 sm:$0xff]  }
  0x53   :  { %1784 = vmatpush1.bf16.msra.mxu0 %v3028_v27  ;;  %1744 = vmatprep.subr.bf16.mxu1 %v3029_v28  ;;  %v3088_v59 = vld [vmem:[#allocation3 + $0x24] ss:$16 sps:$4 sm:$0xff]   ;;  %v101_v62 = vrot.slane %v3087_v58, %v3648_v53  ;;  %v3064_v0 = vld [vmem:[#allocation5 + $0x380] ss:$16 sps:$4 sm:$0xff]   ;;  %v3100_v27 = vld [vmem:[#allocation5 + $0x2c] ss:$16 sps:$4 sm:$0xff]  }
  0x54   :  { %1785 = vmatprep.subr.bf16.mxu0 %v3031_v29  ;;  %v115_v1 = vrot.slane %v3088_v59, %v3648_v53  ;;  %v3065_v2 = vld [vmem:[#allocation5 + $0x1a4] ss:$16 sps:$4 sm:$0xff]   ;;  %v117_v3 = vcombine.high %v94_v60, %v108_v61  ;;  %v3069_v7 = vld [vmem:[#allocation5 + $0x1a0] ss:$16 sps:$4 sm:$0xff]   ;;  %v116_v18 = vcombine.low %v94_v60, %v108_v61  ;;  %v3098_v29 = vld [vmem:[#allocation5 + $0x28] ss:$16 sps:$4 sm:$0xff]  }
  0x55   :  { %v3067_v4 = vld [vmem:[#allocation5 + $0x3a4] ss:$16 sps:$4 sm:$0xff]   ;;  %v3070_v8 = vld [vmem:[#allocation5 + $0x3a0] ss:$16 sps:$4 sm:$0xff]   ;;  %v3134_v59 = vld [vmem:[#allocation5 + $0xe8] ss:$16 sps:$4 sm:$0xff]  }
  0x56   :  { %1745 = vmatpush1.bf16.msra.mxu1 %v3033_v30  ;;  %v119_v5 = vcombine.high %v101_v62, %v115_v1  ;;  %v165_v6 = vpack.c.bf16 %v117_v3, %v117_v3  ;;  %v3071_v10 = vld [vmem:[#allocation5 + $0x1c4] ss:$16 sps:$4 sm:$0xff]   ;;  %v3075_v12 = vld [vmem:[#allocation5 + $0x1c0] ss:$16 sps:$4 sm:$0xff]   ;;  %v118_v19 = vcombine.low %v101_v62, %v115_v1  ;;  %v3657_v22 = vpack.c.bf16 %v116_v18, %v116_v18  ;;  %v3142_v61 = vld [vmem:[#allocation5 + $0x10c] ss:$16 sps:$4 sm:$0xff]  }
  0x57   :  { %1786 = vmatpush1.bf16.msra.mxu0 %v3034_v31  ;;  %1746 = vmatprep.subr.bf16.mxu1 %v3035_v32  ;;  %v3073_v11 = vld [vmem:[#allocation5 + $0x3c4] ss:$16 sps:$4 sm:$0xff]   ;;  %v3076_v13 = vld [vmem:[#allocation5 + $0x3c0] ss:$16 sps:$4 sm:$0xff]   ;;  %v3106_v31 = vld [vmem:[#allocation5 + $0x4c] ss:$16 sps:$4 sm:$0xff]  }
  0x58   :  { %1787 = vmatprep.subr.bf16.mxu0 %v3037_v33  ;;  %v3654_v9 = vpack.c.bf16 %v119_v5, %v119_v5  ;;  %1762 = vmatprep.mubr.bf16.mxu1 %v165_v6  ;;  %v3077_v14 = vld [vmem:[#allocation5 + $0x1e4] ss:$16 sps:$4 sm:$0xff]   ;;  %v3081_v16 = vld [vmem:[#allocation5 + $0x1e0] ss:$16 sps:$4 sm:$0xff]   ;;  %v3659_v25 = vpack.c.bf16 %v118_v19, %v118_v19  ;;  %v3104_v33 = vld [vmem:[#allocation5 + $0x48] ss:$16 sps:$4 sm:$0xff]  }
  0x59   :  { %v3079_v15 = vld [vmem:[#allocation5 + $0x3e4] ss:$16 sps:$4 sm:$0xff]   ;;  %v3082_v17 = vld [vmem:[#allocation5 + $0x3e0] ss:$16 sps:$4 sm:$0xff]   ;;  %v3140_v1 = vld [vmem:[#allocation5 + $0x108] ss:$16 sps:$4 sm:$0xff]  }
  0x5a   :  { %1747 = vmatpush1.bf16.msra.mxu1 %v3039_v34  ;;  %1803 = vmatprep.mubr.bf16.mxu0 %v3654_v9  ;;  %v3091_v20 = vld [vmem:[#allocation5 + $0x404] ss:$16 sps:$4 sm:$0xff]   ;;  %v3089_v23 = vld [vmem:[#allocation5 + $0x400] ss:$16 sps:$4 sm:$0xff]   ;;  %v3148_v3 = vld [vmem:[#allocation5 + $0x12c] ss:$16 sps:$4 sm:$0xff]  }
  0x5b   :  { %1788 = vmatpush1.bf16.msra.mxu0 %v3040_v35  ;;  %1748 = vmatprep.subr.bf16.mxu1 %v3041_v36  ;;  %v3097_v26 = vld [vmem:[#allocation5 + $0x424] ss:$16 sps:$4 sm:$0xff]   ;;  %v3095_v28 = vld [vmem:[#allocation5 + $0x420] ss:$16 sps:$4 sm:$0xff]   ;;  %v3112_v35 = vld [vmem:[#allocation5 + $0x6c] ss:$16 sps:$4 sm:$0xff]  }
  0x5c   :  { %1789 = vmatprep.subr.bf16.mxu0 %v3043_v37  ;;  %v3103_v30 = vld [vmem:[#allocation5 + $0x444] ss:$16 sps:$4 sm:$0xff]   ;;  %v3101_v32 = vld [vmem:[#allocation5 + $0x440] ss:$16 sps:$4 sm:$0xff]   ;;  %v3110_v37 = vld [vmem:[#allocation5 + $0x68] ss:$16 sps:$4 sm:$0xff]  }
  0x5d   :  { %v3109_v34 = vld [vmem:[#allocation5 + $0x464] ss:$16 sps:$4 sm:$0xff]   ;;  %v3107_v36 = vld [vmem:[#allocation5 + $0x460] ss:$16 sps:$4 sm:$0xff]   ;;  %v3146_v5 = vld [vmem:[#allocation5 + $0x128] ss:$16 sps:$4 sm:$0xff]  }
  0x5e   :  { %1749 = vmatpush1.bf16.msra.mxu1 %v3045_v41  ;;  %v3115_v38 = vld [vmem:[#allocation5 + $0x484] ss:$16 sps:$4 sm:$0xff]   ;;  %v3113_v40 = vld [vmem:[#allocation5 + $0x480] ss:$16 sps:$4 sm:$0xff]   ;;  %v3116_v41 = vld [vmem:[#allocation5 + $0x88] ss:$16 sps:$4 sm:$0xff]  }
  0x5f   :  { %1790 = vmatpush1.bf16.msra.mxu0 %v3046_v42  ;;  %1750 = vmatprep.subr.bf16.mxu1 %v3047_v43  ;;  %v3121_v42 = vld [vmem:[#allocation5 + $0x4a4] ss:$16 sps:$4 sm:$0xff]   ;;  %v3124_v43 = vld [vmem:[#allocation5 + $0xac] ss:$16 sps:$4 sm:$0xff]   ;;  %v3131_v58 = vld [vmem:[#allocation5 + $0x4e0] ss:$16 sps:$4 sm:$0xff]  }
  0x60   :  { %1791 = vmatprep.subr.bf16.mxu0 %v3049_v44  ;;  %v3119_v44 = vld [vmem:[#allocation5 + $0x4a0] ss:$16 sps:$4 sm:$0xff]   ;;  %v3139_v60 = vld [vmem:[#allocation5 + $0x504] ss:$16 sps:$4 sm:$0xff]   ;;  %v3164_v18 = vld [vmem:[#allocation5 + $0x188] ss:$16 sps:$4 sm:$0xff]  }
  0x61   :  { %v3169_v19 = vld [vmem:[#allocation5 + $0x5a4] ss:$16 sps:$4 sm:$0xff]  }
  0x62   :  { %1751 = vmatpush1.bf16.msra.mxu1 %v3051_v47  ;;  %v3127_v47 = vld [vmem:[#allocation5 + $0x4c4] ss:$16 sps:$4 sm:$0xff]  }
  0x63   :  { %1792 = vmatpush1.bf16.msra.mxu0 %v3052_v48  ;;  %1752 = vmatprep.subr.bf16.mxu1 %v3053_v49  ;;  %v3130_v48 = vld [vmem:[#allocation5 + $0xcc] ss:$16 sps:$4 sm:$0xff]   ;;  %v3125_v49 = vld [vmem:[#allocation5 + $0x4c0] ss:$16 sps:$4 sm:$0xff]  }
  0x64   :  { %1793 = vmatprep.subr.bf16.mxu0 %v3055_v50  ;;  %v3128_v50 = vld [vmem:[#allocation5 + $0xc8] ss:$16 sps:$4 sm:$0xff]  }
  0x66   :  { %1753 = vmatpush1.bf16.msra.mxu1 %v3057_v51  ;;  %v3133_v51 = vld [vmem:[#allocation5 + $0x4e4] ss:$16 sps:$4 sm:$0xff]  }
  0x67   :  { %1794 = vmatpush1.bf16.msra.mxu0 %v3058_v52  ;;  %1754 = vmatprep.subr.bf16.mxu1 %v3059_v54  ;;  %v3136_v52 = vld [vmem:[#allocation5 + $0xec] ss:$16 sps:$4 sm:$0xff]   ;;  %v3185_v54 = vld [vmem:[#allocation3 + $0x8] ss:$16 sps:$4 sm:$0xff]  }
  0x68   :  { %1795 = vmatprep.subr.bf16.mxu0 %v3061_v55  ;;  %v3187_v55 = vld [vmem:[#allocation3 + $0x28] ss:$16 sps:$4 sm:$0xff]   ;;  %v3664_v56 = vrot.slane %v3185_v54, %v3648_v53 }
  0x69   :  { %v3667_v57 = vrot.slane %v3187_v55, %v3648_v53  ;;  %v3207_v55 = vld [vmem:[#allocation5 + $0x660] ss:$16 sps:$4 sm:$0xff]  }
  0x6a   :  { %1755 = vmatpush1.bf16.msra.mxu1 %v3063_v63 }
  0x6b   :  { %1796 = vmatpush1.bf16.msra.mxu0 %v3064_v0  ;;  %1756 = vmatprep.subr.bf16.mxu1 %v3065_v2  ;;  %v153_v62 = vcombine.high %v3664_v56, %v3667_v57  ;;  %v3137_v0 = vld [vmem:[#allocation5 + $0x500] ss:$16 sps:$4 sm:$0xff]   ;;  %v3145_v2 = vld [vmem:[#allocation5 + $0x524] ss:$16 sps:$4 sm:$0xff]  }
  0x6c   :  { %1797 = vmatprep.subr.bf16.mxu0 %v3067_v4  ;;  %v3143_v4 = vld [vmem:[#allocation5 + $0x520] ss:$16 sps:$4 sm:$0xff]  }
  0x6d   :  { %v3671_v63 = vpack.c.bf16 %v153_v62, %v153_v62  ;;  %v3219_v62 = vld [vmem:[#allocation5 + $0x6a0] ss:$16 sps:$4 sm:$0xff]  }
  0x6e   :  { %1757 = vmatpush1.bf16.msra.mxu1 %v3069_v7  ;;  %v3154_v7 = vld [vmem:[#allocation5 + $0x14c] ss:$16 sps:$4 sm:$0xff]  }
  0x6f   :  { %1798 = vmatpush1.bf16.msra.mxu0 %v3070_v8  ;;  %1758 = vmatprep.subr.bf16.mxu1 %v3071_v10  ;;  %v3149_v8 = vld [vmem:[#allocation5 + $0x540] ss:$16 sps:$4 sm:$0xff]   ;;  %v3152_v10 = vld [vmem:[#allocation5 + $0x148] ss:$16 sps:$4 sm:$0xff]  }
  0x70   :  { %1799 = vmatprep.subr.bf16.mxu0 %v3073_v11  ;;  %v3157_v11 = vld [vmem:[#allocation5 + $0x564] ss:$16 sps:$4 sm:$0xff]  }
  0x72   :  { %1759 = vmatpush1.bf16.msra.mxu1 %v3075_v12  ;;  %v3160_v12 = vld [vmem:[#allocation5 + $0x16c] ss:$16 sps:$4 sm:$0xff]  }
  0x73   :  { %1800 = vmatpush1.bf16.msra.mxu0 %v3076_v13  ;;  %1760 = vmatprep.subr.bf16.mxu1 %v3077_v14  ;;  %v3155_v13 = vld [vmem:[#allocation5 + $0x560] ss:$16 sps:$4 sm:$0xff]   ;;  %v3158_v14 = vld [vmem:[#allocation5 + $0x168] ss:$16 sps:$4 sm:$0xff]  }
  0x74   :  { %1801 = vmatprep.subr.bf16.mxu0 %v3079_v15  ;;  %v3163_v15 = vld [vmem:[#allocation5 + $0x584] ss:$16 sps:$4 sm:$0xff]  }
  0x76   :  { %1761 = vmatpush1.bf16.msra.mxu1 %v3081_v16  ;;  %v3166_v16 = vld [vmem:[#allocation5 + $0x18c] ss:$16 sps:$4 sm:$0xff]  }
  0x77   :  { %1802 = vmatpush1.bf16.msra.mxu0 %v3082_v17  ;;  %1894 = vmatprep.subr.bf16.mxu1 %v3094_v21  ;;  %v3161_v17 = vld [vmem:[#allocation5 + $0x580] ss:$16 sps:$4 sm:$0xff]  }
  0x78   :  { %1812 = vmatprep.subr.bf16.mxu0 %v3091_v20  ;;  %v3172_v20 = vld [vmem:[#allocation5 + $0x1ac] ss:$16 sps:$4 sm:$0xff]   ;;  %v3167_v21 = vld [vmem:[#allocation5 + $0x5a0] ss:$16 sps:$4 sm:$0xff]  }
  0x79   :  { %1763 = vmatmul.mubr.bf16.vlgmr.msra.gmra.mrb[0].mxu1 %v3657_v22 }
  0x7a   :  { %1804 = vmatmul.mubr.bf16.vlgmr.msra.gmra.mrb[0].mxu0 %v3659_v25  ;;  %1895 = vmatpush1.bf16.msra.mxu1 %v3092_v24  ;;  %v3175_v24 = vld [vmem:[#allocation5 + $0x5c4] ss:$16 sps:$4 sm:$0xff]  }
  0x7b   :  { %1813 = vmatpush1.bf16.msra.mxu0 %v3089_v23  ;;  %1896 = vmatprep.subr.bf16.mxu1 %v3100_v27  ;;  %v3170_v23 = vld [vmem:[#allocation5 + $0x1a8] ss:$16 sps:$4 sm:$0xff]   ;;  %v3173_v27 = vld [vmem:[#allocation5 + $0x5c0] ss:$16 sps:$4 sm:$0xff]  }
  0x7c   :  { %1814 = vmatprep.subr.bf16.mxu0 %v3097_v26  ;;  %1926 = vmatprep.mubr.bf16.mxu1 %v165_v6  ;;  %v3151_v6 = vld [vmem:[#allocation5 + $0x544] ss:$16 sps:$4 sm:$0xff]   ;;  %v3178_v26 = vld [vmem:[#allocation5 + $0x1cc] ss:$16 sps:$4 sm:$0xff]  }
  0x7d   :  { %1844 = vmatprep.mubr.bf16.mxu0 %v3671_v63 }
  0x7e   :  { %1897 = vmatpush1.bf16.msra.mxu1 %v3098_v29  ;;  %v3181_v29 = vld [vmem:[#allocation5 + $0x5e4] ss:$16 sps:$4 sm:$0xff]  }
  0x7f   :  { %1815 = vmatpush1.bf16.msra.mxu0 %v3095_v28  ;;  %1898 = vmatprep.subr.bf16.mxu1 %v3106_v31  ;;  %v3176_v28 = vld [vmem:[#allocation5 + $0x1c8] ss:$16 sps:$4 sm:$0xff]   ;;  %v152_v31 = vcombine.low %v3664_v56, %v3667_v57 }
  0x80   :  { %1816 = vmatprep.subr.bf16.mxu0 %v3103_v30  ;;  %v3184_v30 = vld [vmem:[#allocation5 + $0x1ec] ss:$16 sps:$4 sm:$0xff]   ;;  %v3210_v56 = vld [vmem:[#allocation5 + $0x268] ss:$16 sps:$4 sm:$0xff]  }
  0x82   :  { %1899 = vmatpush1.bf16.msra.mxu1 %v3104_v33  ;;  %v3182_v33 = vld [vmem:[#allocation5 + $0x1e8] ss:$16 sps:$4 sm:$0xff]  }
  0x83   :  { %1817 = vmatpush1.bf16.msra.mxu0 %v3101_v32  ;;  %1900 = vmatprep.subr.bf16.mxu1 %v3112_v35  ;;  %v3179_v32 = vld [vmem:[#allocation5 + $0x5e0] ss:$16 sps:$4 sm:$0xff]   ;;  %v3194_v35 = vld [vmem:[#allocation5 + $0x20c] ss:$16 sps:$4 sm:$0xff]  }
  0x84   :  { %1818 = vmatprep.subr.bf16.mxu0 %v3109_v34  ;;  %v3191_v34 = vld [vmem:[#allocation5 + $0x604] ss:$16 sps:$4 sm:$0xff]  }
  0x86   :  { %1901 = vmatpush1.bf16.msra.mxu1 %v3110_v37  ;;  %v3189_v37 = vld [vmem:[#allocation5 + $0x600] ss:$16 sps:$4 sm:$0xff]  }
  0x87   :  { %1819 = vmatpush1.bf16.msra.mxu0 %v3107_v36  ;;  %1902 = vmatprep.subr.bf16.mxu1 %v3118_v39  ;;  %v3676_v36 = vpack.c.bf16 %v152_v31, %v152_v31  ;;  %v3197_v39 = vld [vmem:[#allocation5 + $0x624] ss:$16 sps:$4 sm:$0xff]   ;;  %v3264_v31 = vld [vmem:[#allocation5 + $0x388] ss:$16 sps:$4 sm:$0xff]  }
  0x88   :  { %1820 = vmatprep.subr.bf16.mxu0 %v3115_v38  ;;  %v3192_v38 = vld [vmem:[#allocation5 + $0x208] ss:$16 sps:$4 sm:$0xff]  }
  0x8a   :  { %1903 = vmatpush1.bf16.msra.mxu1 %v3116_v41  ;;  %v3195_v41 = vld [vmem:[#allocation5 + $0x620] ss:$16 sps:$4 sm:$0xff]  }
  0x8b   :  { %1821 = vmatpush1.bf16.msra.mxu0 %v3113_v40  ;;  %1904 = vmatprep.subr.bf16.mxu1 %v3124_v43  ;;  %v3200_v40 = vld [vmem:[#allocation5 + $0x22c] ss:$16 sps:$4 sm:$0xff]   ;;  %v3203_v43 = vld [vmem:[#allocation5 + $0x644] ss:$16 sps:$4 sm:$0xff]  }
  0x8c   :  { %1822 = vmatprep.subr.bf16.mxu0 %v3121_v42  ;;  %v3198_v42 = vld [vmem:[#allocation5 + $0x228] ss:$16 sps:$4 sm:$0xff]  }
  0x8e   :  { %1905 = vmatpush1.bf16.msra.mxu1 %v3122_v45  ;;  %v3285_v45 = vld [vmem:[#allocation3 + $0xc] ss:$16 sps:$4 sm:$0xff]  }
  0x8f   :  { %1823 = vmatpush1.bf16.msra.mxu0 %v3119_v44  ;;  %1906 = vmatprep.subr.bf16.mxu1 %v3130_v48  ;;  %v3206_v44 = vld [vmem:[#allocation5 + $0x24c] ss:$16 sps:$4 sm:$0xff]   ;;  %v3681_v48 = vrot.slane %v3285_v45, %v3648_v53  ;;  %v3282_v45 = vld [vmem:[#allocation5 + $0x3e8] ss:$16 sps:$4 sm:$0xff]  }
  0x90   :  { %1824 = vmatprep.subr.bf16.mxu0 %v3127_v47  ;;  %v3286_v47 = vld [vmem:[#allocation3 + $0x2c] ss:$16 sps:$4 sm:$0xff]  }
  0x92   :  { %1907 = vmatpush1.bf16.msra.mxu1 %v3128_v50  ;;  %v3204_v50 = vld [vmem:[#allocation5 + $0x248] ss:$16 sps:$4 sm:$0xff]  }
  0x93   :  { %1825 = vmatpush1.bf16.msra.mxu0 %v3125_v49  ;;  %1908 = vmatprep.subr.bf16.mxu1 %v3136_v52  ;;  %v3201_v49 = vld [vmem:[#allocation5 + $0x640] ss:$16 sps:$4 sm:$0xff]   ;;  %v3212_v52 = vld [vmem:[#allocation5 + $0x26c] ss:$16 sps:$4 sm:$0xff]  }
  0x94   :  { %1826 = vmatprep.subr.bf16.mxu0 %v3133_v51  ;;  %v3685_v51 = vrot.slane %v3286_v47, %v3648_v53  ;;  %v3218_v53 = vld [vmem:[#allocation5 + $0x28c] ss:$16 sps:$4 sm:$0xff]  }
  0x95   :  { %v3289_v47 = vld [vmem:[#allocation5 + $0x40c] ss:$16 sps:$4 sm:$0xff]  }
  0x96   :  { %1909 = vmatpush1.bf16.msra.mxu1 %v3134_v59  ;;  %v155_v54 = vcombine.high %v3681_v48, %v3685_v51  ;;  %v3216_v59 = vld [vmem:[#allocation5 + $0x288] ss:$16 sps:$4 sm:$0xff]  }
  0x97   :  { %1827 = vmatpush1.bf16.msra.mxu0 %v3131_v58  ;;  %1910 = vmatprep.subr.bf16.mxu1 %v3142_v61  ;;  %v3213_v58 = vld [vmem:[#allocation5 + $0x680] ss:$16 sps:$4 sm:$0xff]   ;;  %v3224_v61 = vld [vmem:[#allocation5 + $0x2ac] ss:$16 sps:$4 sm:$0xff]  }
  0x98   :  { %1828 = vmatprep.subr.bf16.mxu0 %v3139_v60  ;;  %v3689_v57 = vpack.c.bf16 %v155_v54, %v155_v54  ;;  %v3221_v60 = vld [vmem:[#allocation5 + $0x6a4] ss:$16 sps:$4 sm:$0xff]  }
  0x99   :  { %v3385_v54 = vld [vmem:[#allocation7 + $0x4] ss:$8 sps:$4 sm:$0xff]  }
  0x9a   :  { %1911 = vmatpush1.bf16.msra.mxu1 %v3140_v1  ;;  %v3227_v1 = vld [vmem:[#allocation5 + $0x6c4] ss:$16 sps:$4 sm:$0xff]  }
  0x9b   :  { %1829 = vmatpush1.bf16.msra.mxu0 %v3137_v0  ;;  %1912 = vmatprep.subr.bf16.mxu1 %v3148_v3  ;;  %v3222_v0 = vld [vmem:[#allocation5 + $0x2a8] ss:$16 sps:$4 sm:$0xff]   ;;  %v3225_v3 = vld [vmem:[#allocation5 + $0x6c0] ss:$16 sps:$4 sm:$0xff]  }
  0x9c   :  { %1830 = vmatprep.subr.bf16.mxu0 %v3145_v2  ;;  %v3230_v2 = vld [vmem:[#allocation5 + $0x2cc] ss:$16 sps:$4 sm:$0xff]  }
  0x9e   :  { %1913 = vmatpush1.bf16.msra.mxu1 %v3146_v5  ;;  %v3233_v5 = vld [vmem:[#allocation5 + $0x6e4] ss:$16 sps:$4 sm:$0xff]  }
  0x9f   :  { %1831 = vmatpush1.bf16.msra.mxu0 %v3143_v4  ;;  %1914 = vmatprep.subr.bf16.mxu1 %v3154_v7  ;;  %v3228_v4 = vld [vmem:[#allocation5 + $0x2c8] ss:$16 sps:$4 sm:$0xff]   ;;  %v3231_v7 = vld [vmem:[#allocation5 + $0x6e0] ss:$16 sps:$4 sm:$0xff]  }
  0xa0   :  { %1832 = vmatprep.subr.bf16.mxu0 %v3151_v6  ;;  %v3236_v6 = vld [vmem:[#allocation5 + $0x2ec] ss:$16 sps:$4 sm:$0xff]  }
  0xa2   :  { %1915 = vmatpush1.bf16.msra.mxu1 %v3152_v10  ;;  %v3239_v10 = vld [vmem:[#allocation5 + $0x704] ss:$16 sps:$4 sm:$0xff]  }
  0xa3   :  { %1833 = vmatpush1.bf16.msra.mxu0 %v3149_v8  ;;  %1916 = vmatprep.subr.bf16.mxu1 %v3160_v12  ;;  %v3234_v8 = vld [vmem:[#allocation5 + $0x2e8] ss:$16 sps:$4 sm:$0xff]   ;;  %v3237_v12 = vld [vmem:[#allocation5 + $0x700] ss:$16 sps:$4 sm:$0xff]  }
  0xa4   :  { %1834 = vmatprep.subr.bf16.mxu0 %v3157_v11  ;;  %v3242_v11 = vld [vmem:[#allocation5 + $0x30c] ss:$16 sps:$4 sm:$0xff]  }
  0xa6   :  { %1917 = vmatpush1.bf16.msra.mxu1 %v3158_v14  ;;  %v3245_v14 = vld [vmem:[#allocation5 + $0x724] ss:$16 sps:$4 sm:$0xff]  }
  0xa7   :  { %1835 = vmatpush1.bf16.msra.mxu0 %v3155_v13  ;;  %1918 = vmatprep.subr.bf16.mxu1 %v3166_v16  ;;  %v3240_v13 = vld [vmem:[#allocation5 + $0x308] ss:$16 sps:$4 sm:$0xff]   ;;  %v3243_v16 = vld [vmem:[#allocation5 + $0x720] ss:$16 sps:$4 sm:$0xff]  }
  0xa8   :  { %1836 = vmatprep.subr.bf16.mxu0 %v3163_v15  ;;  %v3248_v15 = vld [vmem:[#allocation5 + $0x32c] ss:$16 sps:$4 sm:$0xff]  }
  0xaa   :  { %1919 = vmatpush1.bf16.msra.mxu1 %v3164_v18  ;;  %v3251_v18 = vld [vmem:[#allocation5 + $0x744] ss:$16 sps:$4 sm:$0xff]  }
  0xab   :  { %1837 = vmatpush1.bf16.msra.mxu0 %v3161_v17  ;;  %1920 = vmatprep.subr.bf16.mxu1 %v3172_v20  ;;  %v3246_v17 = vld [vmem:[#allocation5 + $0x328] ss:$16 sps:$4 sm:$0xff]   ;;  %v3249_v20 = vld [vmem:[#allocation5 + $0x740] ss:$16 sps:$4 sm:$0xff]  }
  0xac   :  { %1838 = vmatprep.subr.bf16.mxu0 %v3169_v19  ;;  %v3254_v19 = vld [vmem:[#allocation5 + $0x34c] ss:$16 sps:$4 sm:$0xff]  }
  0xae   :  { %1921 = vmatpush1.bf16.msra.mxu1 %v3170_v23  ;;  %v3257_v23 = vld [vmem:[#allocation5 + $0x764] ss:$16 sps:$4 sm:$0xff]  }
  0xaf   :  { %1839 = vmatpush1.bf16.msra.mxu0 %v3167_v21  ;;  %1922 = vmatprep.subr.bf16.mxu1 %v3178_v26  ;;  %v3252_v21 = vld [vmem:[#allocation5 + $0x348] ss:$16 sps:$4 sm:$0xff]   ;;  %v3255_v26 = vld [vmem:[#allocation5 + $0x760] ss:$16 sps:$4 sm:$0xff]  }
  0xb0   :  { %1840 = vmatprep.subr.bf16.mxu0 %v3175_v24  ;;  %v3260_v24 = vld [vmem:[#allocation5 + $0x36c] ss:$16 sps:$4 sm:$0xff]  }
  0xb2   :  { %1923 = vmatpush1.bf16.msra.mxu1 %v3176_v28  ;;  %v3263_v28 = vld [vmem:[#allocation5 + $0x784] ss:$16 sps:$4 sm:$0xff]  }
  0xb3   :  { %1841 = vmatpush1.bf16.msra.mxu0 %v3173_v27  ;;  %1924 = vmatprep.subr.bf16.mxu1 %v3184_v30  ;;  %v3258_v27 = vld [vmem:[#allocation5 + $0x368] ss:$16 sps:$4 sm:$0xff]   ;;  %v3261_v30 = vld [vmem:[#allocation5 + $0x780] ss:$16 sps:$4 sm:$0xff]  }
  0xb4   :  { %1842 = vmatprep.subr.bf16.mxu0 %v3181_v29  ;;  %v3266_v29 = vld [vmem:[#allocation5 + $0x38c] ss:$16 sps:$4 sm:$0xff]  }
  0xb6   :  { %1925 = vmatpush1.bf16.msra.mxu1 %v3182_v33  ;;  %v3272_v33 = vld [vmem:[#allocation5 + $0x3ac] ss:$16 sps:$4 sm:$0xff]  }
  0xb7   :  { %1843 = vmatpush1.bf16.msra.mxu0 %v3179_v32  ;;  %1935 = vmatprep.subr.bf16.mxu1 %v3194_v35  ;;  %v3269_v32 = vld [vmem:[#allocation5 + $0x7a4] ss:$16 sps:$4 sm:$0xff]   ;;  %v3270_v35 = vld [vmem:[#allocation5 + $0x3a8] ss:$16 sps:$4 sm:$0xff]  }
  0xb8   :  { %1853 = vmatprep.subr.bf16.mxu0 %v3191_v34  ;;  %v3267_v34 = vld [vmem:[#allocation5 + $0x7a0] ss:$16 sps:$4 sm:$0xff]  }
  0xb9   :  { %1927 = vmatmul.mubr.bf16.vlgmr.msra.gmra.mrb[4].mxu1 %v3657_v22  ;;  %v3209_v22 = vld [vmem:[#allocation5 + $0x664] ss:$16 sps:$4 sm:$0xff]  }
  0xba   :  { %1845 = vmatmul.mubr.bf16.vlgmr.msra.gmra.mrb[0].mxu0 %v3676_v36  ;;  %1936 = vmatpush1.bf16.msra.mxu1 %v3192_v38  ;;  %v3278_v38 = vld [vmem:[#allocation5 + $0x3cc] ss:$16 sps:$4 sm:$0xff]  }
  0xbb   :  { %1854 = vmatpush1.bf16.msra.mxu0 %v3189_v37  ;;  %1937 = vmatprep.subr.bf16.mxu1 %v3200_v40  ;;  %v3275_v37 = vld [vmem:[#allocation5 + $0x7c4] ss:$16 sps:$4 sm:$0xff]   ;;  %v3276_v40 = vld [vmem:[#allocation5 + $0x3c8] ss:$16 sps:$4 sm:$0xff]  }
  0xbc   :  { %1855 = vmatprep.subr.bf16.mxu0 %v3197_v39  ;;  %1967 = vmatprep.mubr.bf16.mxu1 %v3654_v9  ;;  %v3215_v9 = vld [vmem:[#allocation5 + $0x684] ss:$16 sps:$4 sm:$0xff]   ;;  %v3273_v39 = vld [vmem:[#allocation5 + $0x7c0] ss:$16 sps:$4 sm:$0xff]  }
  0xbd   :  { %1885 = vmatprep.mubr.bf16.mxu0 %v3689_v57 }
  0xbe   :  { %1938 = vmatpush1.bf16.msra.mxu1 %v3198_v42  ;;  %v3284_v42 = vld [vmem:[#allocation5 + $0x3ec] ss:$16 sps:$4 sm:$0xff]  }
  0xbf   :  { %1856 = vmatpush1.bf16.msra.mxu0 %v3195_v41  ;;  %1939 = vmatprep.subr.bf16.mxu1 %v3206_v44  ;;  %v3281_v41 = vld [vmem:[#allocation5 + $0x7e4] ss:$16 sps:$4 sm:$0xff]   ;;  %v154_v44 = vcombine.low %v3681_v48, %v3685_v51  ;;  %v3290_v48 = vld [vmem:[#allocation5 + $0x428] ss:$16 sps:$4 sm:$0xff]  }
  0xc0   :  { %1857 = vmatprep.subr.bf16.mxu0 %v3203_v43  ;;  %v3279_v43 = vld [vmem:[#allocation5 + $0x7e0] ss:$16 sps:$4 sm:$0xff]   ;;  %v3388_v51 = vld [vmem:[#allocation7 + $0x14] ss:$8 sps:$4 sm:$0xff]  }
  0xc2   :  { %1940 = vmatpush1.bf16.msra.mxu1 %v3204_v50  ;;  %v3694_v50 = vpack.c.bf16 %v154_v44, %v154_v44  ;;  %v3334_v44 = vld [vmem:[#allocation5 + $0x5ec] ss:$16 sps:$4 sm:$0xff]  }
  0xc3   :  { %1858 = vmatpush1.bf16.msra.mxu0 %v3201_v49  ;;  %1941 = vmatprep.subr.bf16.mxu1 %v3212_v52  ;;  %v3287_v49 = vld [vmem:[#allocation5 + $0x408] ss:$16 sps:$4 sm:$0xff]  }
  0xc4   :  { %1859 = vmatprep.subr.bf16.mxu0 %v3209_v22  ;;  %v3292_v22 = vld [vmem:[#allocation5 + $0x42c] ss:$16 sps:$4 sm:$0xff]   ;;  %v3383_v52 = vld [vmem:[#allocation7] ss:$8 sps:$4 sm:$0xff]  }
  0xc6   :  { %1942 = vmatpush1.bf16.msra.mxu1 %v3210_v56  ;;  %v3386_v56 = vld [vmem:[#allocation7 + $0x10] ss:$8 sps:$4 sm:$0xff]  }
  0xc7   :  { %1860 = vmatpush1.bf16.msra.mxu0 %v3207_v55  ;;  %1943 = vmatprep.subr.bf16.mxu1 %v3218_v53  ;;  %v3295_v55 = vld [vmem:[#allocation5 + $0x44c] ss:$16 sps:$4 sm:$0xff]   ;;  %v3293_v53 = vld [vmem:[#allocation5 + $0x448] ss:$16 sps:$4 sm:$0xff]  }
  0xc8   :  { %1861 = vmatprep.subr.bf16.mxu0 %v3215_v9  ;;  %v3391_v9 = vld [vmem:[#allocation7 + $0x24] ss:$8 sps:$4 sm:$0xff]  }
  0xca   :  { %1944 = vmatpush1.bf16.msra.mxu1 %v3216_v59  ;;  %v3296_v59 = vld [vmem:[#allocation5 + $0x468] ss:$16 sps:$4 sm:$0xff]  }
  0xcb   :  { %1862 = vmatpush1.bf16.msra.mxu0 %v3213_v58  ;;  %1945 = vmatprep.subr.bf16.mxu1 %v3224_v61  ;;  %v3298_v58 = vld [vmem:[#allocation5 + $0x46c] ss:$16 sps:$4 sm:$0xff]  }
  0xcc   :  { %1863 = vmatprep.subr.bf16.mxu0 %v3221_v60  ;;  %v3301_v60 = vld [vmem:[#allocation5 + $0x48c] ss:$16 sps:$4 sm:$0xff]  }
  0xcd   :  { %v3394_v61 = vld [vmem:[#allocation7 + $0x34] ss:$8 sps:$4 sm:$0xff]  }
  0xce   :  { %1946 = vmatpush1.bf16.msra.mxu1 %v3222_v0  ;;  %v3299_v0 = vld [vmem:[#allocation5 + $0x488] ss:$16 sps:$4 sm:$0xff]  }
  0xcf   :  { %1864 = vmatpush1.bf16.msra.mxu0 %v3219_v62  ;;  %1947 = vmatprep.subr.bf16.mxu1 %v3230_v2  ;;  %v3397_v62 = vld [vmem:[#allocation7 + $0x44] ss:$8 sps:$4 sm:$0xff]   ;;  %v3395_v2 = vld [vmem:[#allocation7 + $0x40] ss:$8 sps:$4 sm:$0xff]  }
  0xd0   :  { %1865 = vmatprep.subr.bf16.mxu0 %v3227_v1  ;;  %v3304_v1 = vld [vmem:[#allocation5 + $0x4ac] ss:$16 sps:$4 sm:$0xff]  }
  0xd2   :  { %1948 = vmatpush1.bf16.msra.mxu1 %v3228_v4  ;;  %v3302_v4 = vld [vmem:[#allocation5 + $0x4a8] ss:$16 sps:$4 sm:$0xff]  }
  0xd3   :  { %1866 = vmatpush1.bf16.msra.mxu0 %v3225_v3  ;;  %1949 = vmatprep.subr.bf16.mxu1 %v3236_v6  ;;  %v3400_v3 = vld [vmem:[#allocation7 + $0x54] ss:$8 sps:$4 sm:$0xff]   ;;  %v3398_v6 = vld [vmem:[#allocation7 + $0x50] ss:$8 sps:$4 sm:$0xff]  }
  0xd4   :  { %1867 = vmatprep.subr.bf16.mxu0 %v3233_v5  ;;  %v3307_v5 = vld [vmem:[#allocation5 + $0x4cc] ss:$16 sps:$4 sm:$0xff]  }
  0xd6   :  { %1950 = vmatpush1.bf16.msra.mxu1 %v3234_v8  ;;  %v3305_v8 = vld [vmem:[#allocation5 + $0x4c8] ss:$16 sps:$4 sm:$0xff]  }
  0xd7   :  { %1868 = vmatpush1.bf16.msra.mxu0 %v3231_v7  ;;  %1951 = vmatprep.subr.bf16.mxu1 %v3242_v11  ;;  %v3403_v7 = vld [vmem:[#allocation7 + $0x64] ss:$8 sps:$4 sm:$0xff]   ;;  %v3401_v11 = vld [vmem:[#allocation7 + $0x60] ss:$8 sps:$4 sm:$0xff]  }
  0xd8   :  { %1869 = vmatprep.subr.bf16.mxu0 %v3239_v10  ;;  %v3310_v10 = vld [vmem:[#allocation5 + $0x4ec] ss:$16 sps:$4 sm:$0xff]  }
  0xda   :  { %1952 = vmatpush1.bf16.msra.mxu1 %v3240_v13  ;;  %v3308_v13 = vld [vmem:[#allocation5 + $0x4e8] ss:$16 sps:$4 sm:$0xff]  }
  0xdb   :  { %1870 = vmatpush1.bf16.msra.mxu0 %v3237_v12  ;;  %1953 = vmatprep.subr.bf16.mxu1 %v3248_v15  ;;  %v3406_v12 = vld [vmem:[#allocation7 + $0x74] ss:$8 sps:$4 sm:$0xff]   ;;  %v3404_v15 = vld [vmem:[#allocation7 + $0x70] ss:$8 sps:$4 sm:$0xff]  }
  0xdc   :  { %1871 = vmatprep.subr.bf16.mxu0 %v3245_v14  ;;  %v3313_v14 = vld [vmem:[#allocation5 + $0x50c] ss:$16 sps:$4 sm:$0xff]  }
  0xde   :  { %1954 = vmatpush1.bf16.msra.mxu1 %v3246_v17  ;;  %v3311_v17 = vld [vmem:[#allocation5 + $0x508] ss:$16 sps:$4 sm:$0xff]  }
  0xdf   :  { %1872 = vmatpush1.bf16.msra.mxu0 %v3243_v16  ;;  %1955 = vmatprep.subr.bf16.mxu1 %v3254_v19  ;;  %v3409_v16 = vld [vmem:[#allocation7 + $0x84] ss:$8 sps:$4 sm:$0xff]   ;;  %v3407_v19 = vld [vmem:[#allocation7 + $0x80] ss:$8 sps:$4 sm:$0xff]  }
  0xe0   :  { %1873 = vmatprep.subr.bf16.mxu0 %v3251_v18  ;;  %v3316_v18 = vld [vmem:[#allocation5 + $0x52c] ss:$16 sps:$4 sm:$0xff]  }
  0xe2   :  { %1956 = vmatpush1.bf16.msra.mxu1 %v3252_v21  ;;  %v3314_v21 = vld [vmem:[#allocation5 + $0x528] ss:$16 sps:$4 sm:$0xff]  }
  0xe3   :  { %1874 = vmatpush1.bf16.msra.mxu0 %v3249_v20  ;;  %1957 = vmatprep.subr.bf16.mxu1 %v3260_v24  ;;  %v3412_v20 = vld [vmem:[#allocation7 + $0x94] ss:$8 sps:$4 sm:$0xff]   ;;  %v3410_v24 = vld [vmem:[#allocation7 + $0x90] ss:$8 sps:$4 sm:$0xff]  }
  0xe4   :  { %1875 = vmatprep.subr.bf16.mxu0 %v3257_v23  ;;  %v3319_v23 = vld [vmem:[#allocation5 + $0x54c] ss:$16 sps:$4 sm:$0xff]  }
  0xe6   :  { %1958 = vmatpush1.bf16.msra.mxu1 %v3258_v27  ;;  %v3317_v27 = vld [vmem:[#allocation5 + $0x548] ss:$16 sps:$4 sm:$0xff]  }
  0xe7   :  { %1876 = vmatpush1.bf16.msra.mxu0 %v3255_v26  ;;  %1959 = vmatprep.subr.bf16.mxu1 %v3266_v29  ;;  %v3415_v26 = vld [vmem:[#allocation7 + $0xa4] ss:$8 sps:$4 sm:$0xff]   ;;  %v3413_v29 = vld [vmem:[#allocation7 + $0xa0] ss:$8 sps:$4 sm:$0xff]  }
  0xe8   :  { %1877 = vmatprep.subr.bf16.mxu0 %v3263_v28  ;;  %v3322_v28 = vld [vmem:[#allocation5 + $0x56c] ss:$16 sps:$4 sm:$0xff]  }
  0xea   :  { %1960 = vmatpush1.bf16.msra.mxu1 %v3264_v31  ;;  %v3320_v31 = vld [vmem:[#allocation5 + $0x568] ss:$16 sps:$4 sm:$0xff]  }
  0xeb   :  { %1878 = vmatpush1.bf16.msra.mxu0 %v3261_v30  ;;  %1961 = vmatprep.subr.bf16.mxu1 %v3272_v33  ;;  %v3418_v30 = vld [vmem:[#allocation7 + $0xb4] ss:$8 sps:$4 sm:$0xff]   ;;  %v3416_v33 = vld [vmem:[#allocation7 + $0xb0] ss:$8 sps:$4 sm:$0xff]  }
  0xec   :  { %1879 = vmatprep.subr.bf16.mxu0 %v3269_v32  ;;  %v3325_v32 = vld [vmem:[#allocation5 + $0x58c] ss:$16 sps:$4 sm:$0xff]  }
  0xee   :  { %1962 = vmatpush1.bf16.msra.mxu1 %v3270_v35  ;;  %v3323_v35 = vld [vmem:[#allocation5 + $0x588] ss:$16 sps:$4 sm:$0xff]  }
  0xef   :  { %1880 = vmatpush1.bf16.msra.mxu0 %v3267_v34  ;;  %1963 = vmatprep.subr.bf16.mxu1 %v3278_v38  ;;  %v3421_v34 = vld [vmem:[#allocation7 + $0xc4] ss:$8 sps:$4 sm:$0xff]   ;;  %v3419_v38 = vld [vmem:[#allocation7 + $0xc0] ss:$8 sps:$4 sm:$0xff]  }
  0xf0   :  { %1881 = vmatprep.subr.bf16.mxu0 %v3275_v37  ;;  %v3328_v37 = vld [vmem:[#allocation5 + $0x5ac] ss:$16 sps:$4 sm:$0xff]  }
  0xf2   :  { %1964 = vmatpush1.bf16.msra.mxu1 %v3276_v40  ;;  %v3326_v40 = vld [vmem:[#allocation5 + $0x5a8] ss:$16 sps:$4 sm:$0xff]  }
  0xf3   :  { %1882 = vmatpush1.bf16.msra.mxu0 %v3273_v39  ;;  %1965 = vmatprep.subr.bf16.mxu1 %v3284_v42  ;;  %v3424_v39 = vld [vmem:[#allocation7 + $0xd4] ss:$8 sps:$4 sm:$0xff]   ;;  %v3422_v42 = vld [vmem:[#allocation7 + $0xd0] ss:$8 sps:$4 sm:$0xff]  }
  0xf4   :  { %1883 = vmatprep.subr.bf16.mxu0 %v3281_v41  ;;  %v3331_v41 = vld [vmem:[#allocation5 + $0x5cc] ss:$16 sps:$4 sm:$0xff]  }
  0xf6   :  { %1966 = vmatpush1.bf16.msra.mxu1 %v3282_v45  ;;  %v3332_v45 = vld [vmem:[#allocation5 + $0x5e8] ss:$16 sps:$4 sm:$0xff]  }
  0xf7   :  { %1884 = vmatpush1.bf16.msra.mxu0 %v3279_v43  ;;  %1976 = vmatprep.subr.bf16.mxu1 %v3289_v47  ;;  %v3329_v43 = vld [vmem:[#allocation5 + $0x5c8] ss:$16 sps:$4 sm:$0xff]   ;;  %v3337_v47 = vld [vmem:[#allocation5 + $0x60c] ss:$16 sps:$4 sm:$0xff]  }
  0xf8   :  { %2470 = vmatprep.subr.bf16.mxu0 %v3385_v54  ;;  %v3343_v54 = vld [vmem:[#allocation5 + $0x64c] ss:$16 sps:$4 sm:$0xff]  }
  0xf9   :  { %1968 = vmatmul.mubr.bf16.vlgmr.msra.gmra.mrb[4].mxu1 %v3659_v25  ;;  %v3389_v25 = vld [vmem:[#allocation7 + $0x20] ss:$8 sps:$4 sm:$0xff]  }
  0xfa   :  { %1886 = vmatmul.mubr.bf16.vlgmr.msra.gmra.mrb[0].mxu0 %v3694_v50  ;;  %1977 = vmatpush1.bf16.msra.mxu1 %v3287_v49  ;;  %v3335_v49 = vld [vmem:[#allocation5 + $0x608] ss:$16 sps:$4 sm:$0xff]  }
  0xfb   :  { %2008 = vmatprep.mubr.bf16.mxu1 %v3671_v63  ;;  %1978 = vmatprep.subr.bf16.mxu1 %v3292_v22  ;;  %v3392_v63 = vld [vmem:[#allocation7 + $0x30] ss:$8 sps:$4 sm:$0xff]   ;;  %v3340_v22 = vld [vmem:[#allocation5 + $0x62c] ss:$16 sps:$4 sm:$0xff]  }
  0xfc   :  { %2471 = vmatpush1.bf16.msra.mxu0 %v3383_v52  ;;  %v3338_v52 = vld [vmem:[#allocation5 + $0x628] ss:$16 sps:$4 sm:$0xff]  }
  0xfd   :  { %2472 = vmatprep.subr.bf16.mxu0 %v3388_v51  ;;  %v3346_v51 = vld [vmem:[#allocation5 + $0x66c] ss:$16 sps:$4 sm:$0xff]  }
  0xfe   :  { %1979 = vmatpush1.bf16.msra.mxu1 %v3290_v48  ;;  %v3341_v48 = vld [vmem:[#allocation5 + $0x648] ss:$16 sps:$4 sm:$0xff]  }
  0xff   :  { %1980 = vmatprep.subr.bf16.mxu1 %v3295_v55  ;;  %v3344_v55 = vld [vmem:[#allocation5 + $0x668] ss:$16 sps:$4 sm:$0xff]  }
 0x100   :  { %2473 = vmatpush1.bf16.msra.mxu0 %v3386_v56  ;;  %v3349_v56 = vld [vmem:[#allocation5 + $0x68c] ss:$16 sps:$4 sm:$0xff]  }
 0x101   :  { %2474 = vmatprep.subr.bf16.mxu0 %v3391_v9  ;;  %v3347_v9 = vld [vmem:[#allocation5 + $0x688] ss:$16 sps:$4 sm:$0xff]  }
 0x102   :  { %1981 = vmatpush1.bf16.msra.mxu1 %v3293_v53  ;;  %v3352_v53 = vld [vmem:[#allocation5 + $0x6ac] ss:$16 sps:$4 sm:$0xff]  }
 0x103   :  { %1982 = vmatprep.subr.bf16.mxu1 %v3298_v58  ;;  %v3355_v58 = vld [vmem:[#allocation5 + $0x6cc] ss:$16 sps:$4 sm:$0xff]  }
 0x104   :  { %2475 = vmatpush1.bf16.msra.mxu0 %v3389_v25 }
 0x105   :  { %2476 = vmatprep.subr.bf16.mxu0 %v3394_v61 }
 0x106   :  { %1983 = vmatpush1.bf16.msra.mxu1 %v3296_v59 }
 0x107   :  { %1984 = vmatprep.subr.bf16.mxu1 %v3301_v60  ;;  %v3425_v60 = vld [vmem:[#allocation7 + $0xe0] ss:$8 sps:$4 sm:$0xff]  }
 0x108   :  { %2477 = vmatpush1.bf16.msra.mxu0 %v3392_v63  ;;  %v3353_v63 = vld [vmem:[#allocation5 + $0x6c8] ss:$16 sps:$4 sm:$0xff]  }
 0x109   :  { %2478 = vmatprep.subr.bf16.mxu0 %v3397_v62 }
 0x10a   :  { %1985 = vmatpush1.bf16.msra.mxu1 %v3299_v0  ;;  %v3358_v0 = vld [vmem:[#allocation5 + $0x6ec] ss:$16 sps:$4 sm:$0xff]  }
 0x10b   :  { %1986 = vmatprep.subr.bf16.mxu1 %v3304_v1  ;;  %v3430_v1 = vld [vmem:[#allocation7 + $0xf4] ss:$8 sps:$4 sm:$0xff]  }
 0x10c   :  { %2479 = vmatpush1.bf16.msra.mxu0 %v3395_v2  ;;  %v3428_v2 = vld [vmem:[#allocation7 + $0xf0] ss:$8 sps:$4 sm:$0xff]  }
 0x10d   :  { %2480 = vmatprep.subr.bf16.mxu0 %v3400_v3  ;;  %v3356_v3 = vld [vmem:[#allocation5 + $0x6e8] ss:$16 sps:$4 sm:$0xff]  }
 0x10e   :  { %1987 = vmatpush1.bf16.msra.mxu1 %v3302_v4  ;;  %v3361_v4 = vld [vmem:[#allocation5 + $0x70c] ss:$16 sps:$4 sm:$0xff]  }
 0x10f   :  { %1988 = vmatprep.subr.bf16.mxu1 %v3307_v5  ;;  %v3359_v5 = vld [vmem:[#allocation5 + $0x708] ss:$16 sps:$4 sm:$0xff]  }
 0x110   :  { %2481 = vmatpush1.bf16.msra.mxu0 %v3398_v6  ;;  %v3433_v6 = vld [vmem:[#allocation7 + $0x104] ss:$8 sps:$4 sm:$0xff]  }
 0x111   :  { %2482 = vmatprep.subr.bf16.mxu0 %v3403_v7  ;;  %v3364_v7 = vld [vmem:[#allocation5 + $0x72c] ss:$16 sps:$4 sm:$0xff]  }
 0x112   :  { %1989 = vmatpush1.bf16.msra.mxu1 %v3305_v8  ;;  %v3362_v8 = vld [vmem:[#allocation5 + $0x728] ss:$16 sps:$4 sm:$0xff]  }
 0x113   :  { %1990 = vmatprep.subr.bf16.mxu1 %v3310_v10  ;;  %v3367_v10 = vld [vmem:[#allocation5 + $0x74c] ss:$16 sps:$4 sm:$0xff]  }
 0x114   :  { %2483 = vmatpush1.bf16.msra.mxu0 %v3401_v11  ;;  %v3365_v11 = vld [vmem:[#allocation5 + $0x748] ss:$16 sps:$4 sm:$0xff]  }
 0x115   :  { %2484 = vmatprep.subr.bf16.mxu0 %v3406_v12  ;;  %v3370_v12 = vld [vmem:[#allocation5 + $0x76c] ss:$16 sps:$4 sm:$0xff]  }
 0x116   :  { %1991 = vmatpush1.bf16.msra.mxu1 %v3308_v13  ;;  %v3368_v13 = vld [vmem:[#allocation5 + $0x768] ss:$16 sps:$4 sm:$0xff]  }
 0x117   :  { %1992 = vmatprep.subr.bf16.mxu1 %v3313_v14  ;;  %v3373_v14 = vld [vmem:[#allocation5 + $0x78c] ss:$16 sps:$4 sm:$0xff]  }
 0x118   :  { %2485 = vmatpush1.bf16.msra.mxu0 %v3404_v15  ;;  %v3371_v15 = vld [vmem:[#allocation5 + $0x788] ss:$16 sps:$4 sm:$0xff]  }
 0x119   :  { %2486 = vmatprep.subr.bf16.mxu0 %v3409_v16  ;;  %v3376_v16 = vld [vmem:[#allocation5 + $0x7ac] ss:$16 sps:$4 sm:$0xff]  }
 0x11a   :  { %1993 = vmatpush1.bf16.msra.mxu1 %v3311_v17  ;;  %v3374_v17 = vld [vmem:[#allocation5 + $0x7a8] ss:$16 sps:$4 sm:$0xff]  }
 0x11b   :  { %1994 = vmatprep.subr.bf16.mxu1 %v3316_v18  ;;  %v3379_v18 = vld [vmem:[#allocation5 + $0x7cc] ss:$16 sps:$4 sm:$0xff]  }
 0x11c   :  { %2487 = vmatpush1.bf16.msra.mxu0 %v3407_v19  ;;  %v3377_v19 = vld [vmem:[#allocation5 + $0x7c8] ss:$16 sps:$4 sm:$0xff]  }
 0x11d   :  { %2488 = vmatprep.subr.bf16.mxu0 %v3412_v20  ;;  %v3382_v20 = vld [vmem:[#allocation5 + $0x7ec] ss:$16 sps:$4 sm:$0xff]  }
 0x11e   :  { %1995 = vmatpush1.bf16.msra.mxu1 %v3314_v21  ;;  %v3380_v21 = vld [vmem:[#allocation5 + $0x7e8] ss:$16 sps:$4 sm:$0xff]  }
 0x11f   :  { %1996 = vmatprep.subr.bf16.mxu1 %v3319_v23  ;;  %v3703_v23 = vsub.s32 0, %v3645_v46 }
 0x120   :  { %2489 = vmatpush1.bf16.msra.mxu0 %v3410_v24  ;;  %v3708_v24 = vld [vmem:[%s3739_s2] sm:$0xf] }
 0x121   :  { %2490 = vmatprep.subr.bf16.mxu0 %v3415_v26  ;;  %v3711_v26 = vsub.s32 1, %v3645_v46 }
 0x122   :  { %1997 = vmatpush1.bf16.msra.mxu1 %v3317_v27  ;;  %v433_v27 = vrot.slane %v3708_v24, %v3703_v23 }
 0x123   :  { %1998 = vmatprep.subr.bf16.mxu1 %v3322_v28  ;;  %v437_v28 = vrot.slane %v3708_v24, %v3711_v26 }
 0x124   :  { %2491 = vmatpush1.bf16.msra.mxu0 %v3413_v29 }
 0x125   :  { %2492 = vmatprep.subr.bf16.mxu0 %v3418_v30 }
 0x126   :  { %1999 = vmatpush1.bf16.msra.mxu1 %v3320_v31 }
 0x127   :  { %2000 = vmatprep.subr.bf16.mxu1 %v3325_v32 }
 0x128   :  { %2493 = vmatpush1.bf16.msra.mxu0 %v3416_v33 }
 0x129   :  { %2494 = vmatprep.subr.bf16.mxu0 %v3421_v34 }
 0x12a   :  { %2001 = vmatpush1.bf16.msra.mxu1 %v3323_v35 }
 0x12b   :  { %2002 = vmatprep.subr.bf16.mxu1 %v3328_v37 }
 0x12c   :  { %2495 = vmatpush1.bf16.msra.mxu0 %v3419_v38 }
 0x12d   :  { %2496 = vmatprep.subr.bf16.mxu0 %v3424_v39 }
 0x12e   :  { %2003 = vmatpush1.bf16.msra.mxu1 %v3326_v40 }
 0x12f   :  { %2004 = vmatprep.subr.bf16.mxu1 %v3331_v41 }
 0x130   :  { %2497 = vmatpush1.bf16.msra.mxu0 %v3422_v42  ;;  %v3431_v42 = vld [vmem:[#allocation7 + $0x100] ss:$8 sps:$4 sm:$0xff]  }
 0x132   :  { %2005 = vmatpush1.bf16.msra.mxu1 %v3329_v43 }
 0x133   :  { %2006 = vmatprep.subr.bf16.mxu1 %v3334_v44  ;;  %v3436_v44 = vld [vmem:[#allocation7 + $0x114] ss:$8 sps:$4 sm:$0xff]  }
 0x136   :  { %2007 = vmatpush1.bf16.msra.mxu1 %v3332_v45  ;;  %v3434_v45 = vld [vmem:[#allocation7 + $0x110] ss:$8 sps:$4 sm:$0xff]  }
 0x137   :  { %2017 = vmatprep.subr.bf16.mxu1 %v3337_v47  ;;  %v3439_v47 = vld [vmem:[#allocation7 + $0x124] ss:$8 sps:$4 sm:$0xff]  }
 0x139   :  { %2009 = vmatmul.mubr.bf16.vlgmr.msra.gmra.mrb[4].mxu1 %v3676_v36  ;;  %v3350_v36 = vld [vmem:[#allocation5 + $0x6a8] ss:$16 sps:$4 sm:$0xff]  }
 0x13a   :  { %2018 = vmatpush1.bf16.msra.mxu1 %v3335_v49  ;;  %2049 = vmatprep.mubr.bf16.mxu1 %v3689_v57  ;;  %v3427_v57 = vld [vmem:[#allocation7 + $0xe4] ss:$8 sps:$4 sm:$0xff]   ;;  %v3437_v49 = vld [vmem:[#allocation7 + $0x120] ss:$8 sps:$4 sm:$0xff]  }
 0x13b   :  { %2019 = vmatprep.subr.bf16.mxu1 %v3340_v22  ;;  %2498 = vmatprep.subr.bf16.mxu0 %v3427_v57  ;;  %v3442_v22 = vld [vmem:[#allocation7 + $0x134] ss:$8 sps:$4 sm:$0xff]  }
 0x13c   :  { %2499 = vmatpush1.bf16.msra.mxu0 %v3425_v60  ;;  %v3460_v57 = vld [vmem:[#allocation7 + $0x194] ss:$8 sps:$4 sm:$0xff]   ;;  %v3463_v60 = vld [vmem:[#allocation7 + $0x1a4] ss:$8 sps:$4 sm:$0xff]  }
 0x13d   :  { %2500 = vmatprep.subr.bf16.mxu0 %v3430_v1  ;;  %v3467_v1 = vld [vmem:[#allocation7 + $0x1c0] ss:$8 sps:$4 sm:$0xff]  }
 0x13e   :  { %2020 = vmatpush1.bf16.msra.mxu1 %v3338_v52  ;;  %v3440_v52 = vld [vmem:[#allocation7 + $0x130] ss:$8 sps:$4 sm:$0xff]  }
 0x13f   :  { %2021 = vmatprep.subr.bf16.mxu1 %v3343_v54  ;;  %v3445_v54 = vld [vmem:[#allocation7 + $0x144] ss:$8 sps:$4 sm:$0xff]  }
 0x140   :  { %2501 = vmatpush1.bf16.msra.mxu0 %v3428_v2  ;;  %v3472_v2 = vld [vmem:[#allocation7 + $0x1d4] ss:$8 sps:$4 sm:$0xff]  }
 0x141   :  { %2511 = vmatprep.subr.bf16.mxu0 %v3433_v6  ;;  %v3478_v6 = vld [vmem:[#allocation7 + $0x1f4] ss:$8 sps:$4 sm:$0xff]  }
 0x142   :  { %2022 = vmatpush1.bf16.msra.mxu1 %v3341_v48  ;;  %v3443_v48 = vld [vmem:[#allocation7 + $0x140] ss:$8 sps:$4 sm:$0xff]  }
 0x143   :  { %2023 = vmatprep.subr.bf16.mxu1 %v3346_v51  ;;  %v3448_v51 = vld [vmem:[#allocation7 + $0x154] ss:$8 sps:$4 sm:$0xff]  }
 0x146   :  { %2024 = vmatpush1.bf16.msra.mxu1 %v3344_v55  ;;  %v3446_v55 = vld [vmem:[#allocation7 + $0x150] ss:$8 sps:$4 sm:$0xff]  }
 0x147   :  { %2025 = vmatprep.subr.bf16.mxu1 %v3349_v56  ;;  %v3451_v56 = vld [vmem:[#allocation7 + $0x164] ss:$8 sps:$4 sm:$0xff]  }
 0x14a   :  { %2026 = vmatpush1.bf16.msra.mxu1 %v3347_v9  ;;  %v3449_v9 = vld [vmem:[#allocation7 + $0x160] ss:$8 sps:$4 sm:$0xff]  }
 0x14b   :  { %2027 = vmatprep.subr.bf16.mxu1 %v3352_v53  ;;  %v3454_v53 = vld [vmem:[#allocation7 + $0x174] ss:$8 sps:$4 sm:$0xff]  }
 0x14c   :  { %v1764_v25 = vpop.f32.mrb[0].mxu1 }
 0x14d   :  { %v1766_v59 = vpop.f32.mrb[1].mxu1  ;;  %v1765_v29 = vadd.f32 %v1764_v25, %v433_v27  ;;  %v3455_v25 = vld [vmem:[#allocation7 + $0x180] ss:$8 sps:$4 sm:$0xff]  }
 0x14e   :  { %v1768_v61 = vpop.f32.mrb[2].mxu1  ;;  %2028 = vmatpush1.bf16.msra.mxu1 %v3350_v36  ;;  %v1767_v30 = vadd.f32 %v1766_v59, %v437_v28  ;;  %v3452_v36 = vld [vmem:[#allocation7 + $0x170] ss:$8 sps:$4 sm:$0xff]  }
 0x14f   :  { %v1769_v62 = vpop.f32.mrb[3].mxu1  ;;  %2029 = vmatprep.subr.bf16.mxu1 %v3355_v58  ;;  %v3457_v58 = vld [vmem:[#allocation7 + $0x184] ss:$8 sps:$4 sm:$0xff]   ;;  %v3458_v59 = vld [vmem:[#allocation7 + $0x190] ss:$8 sps:$4 sm:$0xff]  }
 0x150   :  { %v3461_v61 = vld [vmem:[#allocation7 + $0x1a0] ss:$8 sps:$4 sm:$0xff]   ;;  %v3464_v62 = vld [vmem:[#allocation7 + $0x1b0] ss:$8 sps:$4 sm:$0xff]  }
 0x152   :  { %2030 = vmatpush1.bf16.msra.mxu1 %v3353_v63  ;;  %v3466_v63 = vld [vmem:[#allocation7 + $0x1b4] ss:$8 sps:$4 sm:$0xff]  }
 0x153   :  { %2031 = vmatprep.subr.bf16.mxu1 %v3358_v0  ;;  %v3469_v0 = vld [vmem:[#allocation7 + $0x1c4] ss:$8 sps:$4 sm:$0xff]  }
 0x156   :  { %2032 = vmatpush1.bf16.msra.mxu1 %v3356_v3  ;;  %v3470_v3 = vld [vmem:[#allocation7 + $0x1d0] ss:$8 sps:$4 sm:$0xff]  }
 0x157   :  { %2033 = vmatprep.subr.bf16.mxu1 %v3361_v4  ;;  %v3475_v4 = vld [vmem:[#allocation7 + $0x1e4] ss:$8 sps:$4 sm:$0xff]  }
 0x15a   :  { %2034 = vmatpush1.bf16.msra.mxu1 %v3359_v5  ;;  %v3473_v5 = vld [vmem:[#allocation7 + $0x1e0] ss:$8 sps:$4 sm:$0xff]  }
 0x15b   :  { %2035 = vmatprep.subr.bf16.mxu1 %v3364_v7  ;;  %v3476_v7 = vld [vmem:[#allocation7 + $0x1f0] ss:$8 sps:$4 sm:$0xff]  }
 0x15e   :  { %2036 = vmatpush1.bf16.msra.mxu1 %v3362_v8  ;;  %v440_v8 = vsub.s32 2, %v3645_v46 }
 0x15f   :  { %2037 = vmatprep.subr.bf16.mxu1 %v3367_v10  ;;  %v444_v10 = vsub.s32 3, %v3645_v46  ;;  %v2138_v46 = vld [vmem:[%s3741_s4] sm:$0x3] }
 0x162   :  { %2038 = vmatpush1.bf16.msra.mxu1 %v3365_v11  ;;  %v441_v11 = vrot.slane %v3708_v24, %v440_v8 }
 0x163   :  { %2039 = vmatprep.subr.bf16.mxu1 %v3370_v12  ;;  %v445_v12 = vrot.slane %v3708_v24, %v444_v10  ;;  %v2143_v24 = vrot.slane %v2138_v46, %v3703_v23 }
 0x166   :  { %2040 = vmatpush1.bf16.msra.mxu1 %v3368_v13 }
 0x167   :  { %2041 = vmatprep.subr.bf16.mxu1 %v3373_v14 }
 0x16a   :  { %2042 = vmatpush1.bf16.msra.mxu1 %v3371_v15 }
 0x16b   :  { %2043 = vmatprep.subr.bf16.mxu1 %v3376_v16 }
 0x16e   :  { %2044 = vmatpush1.bf16.msra.mxu1 %v3374_v17 }
 0x16f   :  { %2045 = vmatprep.subr.bf16.mxu1 %v3379_v18 }
 0x172   :  { %2046 = vmatpush1.bf16.msra.mxu1 %v3377_v19 }
 0x173   :  { %2047 = vmatprep.subr.bf16.mxu1 %v3382_v20 }
 0x176   :  { %2048 = vmatpush1.bf16.msra.mxu1 %v3380_v21 }
 0x179   :  { %2050 = vmatmul.mubr.bf16.vlgmr.msra.gmra.mrb[4].mxu1 %v3694_v50 }
 0x1cd   :  { %v1887_v50 = vpop.f32.mrb[0].mxu0 }
 0x1ce   :  { %v2948_v31 = vadd.f32 %v1887_v50, %v1765_v29  ;;  %v1889_v32 = vpop.f32.mrb[1].mxu0  ;;  %v2558_v50 = vld [vmem:[%s3742_s5] sm:$0x3] }
 0x1cf   :  { %v2950_v33 = vadd.f32 %v1889_v32, %v1767_v30  ;;  %v1891_v34 = vpop.f32.mrb[2].mxu0  ;;  %v2147_v30 = vrot.slane %v2138_v46, %v3711_v26 }
 0x1d0   :  { %vm2058_vm0 = vcmp.gt.f32.partialorder %v2948_v31, 0.0  ;;  %v2062_v35 = vmul.f32 0.2, %v2948_v31  ;;  %v1892_v37 = vpop.f32.mrb[3].mxu0 }
 0x1d1   :  { %vm2059_vm1 = vcmp.gt.f32.partialorder %v2950_v33, 0.0  ;;  %v2063_v38 = vmul.f32 0.2, %v2950_v33  ;;  %v2563_v37 = vrot.slane %v2558_v50, %v3703_v23 }
 0x1d2   :  { %v2066_v39 = vsel %vm2058_vm0, %v2948_v31, %v2062_v35 }
 0x1d3   :  { %v2067_v40 = vsel %vm2059_vm1, %v2950_v33, %v2063_v38  ;;  %v2070_v43 = vpack.c.bf16 %v2066_v39, %v2066_v39 }
 0x1d4   :  { %v2071_v41 = vpack.c.bf16 %v2067_v40, %v2067_v40  ;;  %v2567_v40 = vrot.slane %v2558_v50, %v3711_v26 }
 0x1d6   :  { %2502 = vmatprep.mubr.bf16.mxu0 %v2071_v41 }
 0x1d7   :  { %2503 = vmatmul.mubr.bf16.vlgmr.msra.gmra.mrb[4].mxu0 %v2070_v43 }
 0x1d8   :  { %2512 = vmatpush1.bf16.msra.mxu0 %v3431_v42 }
 0x1d9   :  { %2513 = vmatprep.subr.bf16.mxu0 %v3436_v44 }
 0x1dc   :  { %2514 = vmatpush1.bf16.msra.mxu0 %v3434_v45 }
 0x1dd   :  { %2515 = vmatprep.subr.bf16.mxu0 %v3439_v47 }
 0x1e0   :  { %2516 = vmatpush1.bf16.msra.mxu0 %v3437_v49  ;;  %v2576_v49 = vstv %s3743_s6 }
 0x1e1   :  { %2517 = vmatprep.subr.bf16.mxu0 %v3442_v22 }
 0x1e4   :  { %2518 = vmatpush1.bf16.msra.mxu0 %v3440_v52 }
 0x1e5   :  { %2519 = vmatprep.subr.bf16.mxu0 %v3445_v54 }
 0x1e8   :  { %2520 = vmatpush1.bf16.msra.mxu0 %v3443_v48 }
 0x1e9   :  { %2521 = vmatprep.subr.bf16.mxu0 %v3448_v51 }
 0x1ec   :  { %2522 = vmatpush1.bf16.msra.mxu0 %v3446_v55 }
 0x1ed   :  { %2523 = vmatprep.subr.bf16.mxu0 %v3451_v56 }
 0x1f0   :  { %2524 = vmatpush1.bf16.msra.mxu0 %v3449_v9 }
 0x1f1   :  { %2525 = vmatprep.subr.bf16.mxu0 %v3454_v53 }
 0x1f4   :  { %2526 = vmatpush1.bf16.msra.mxu0 %v3452_v36 }
 0x1f5   :  { %2527 = vmatprep.subr.bf16.mxu0 %v3457_v58 }
 0x1f8   :  { %2528 = vmatpush1.bf16.msra.mxu0 %v3455_v25 }
 0x1f9   :  { %2529 = vmatprep.subr.bf16.mxu0 %v3460_v57 }
 0x1fc   :  { %2530 = vmatpush1.bf16.msra.mxu0 %v3458_v59 }
 0x1fd   :  { %2531 = vmatprep.subr.bf16.mxu0 %v3463_v60 }
 0x200   :  { %2532 = vmatpush1.bf16.msra.mxu0 %v3461_v61 }
 0x201   :  { %2533 = vmatprep.subr.bf16.mxu0 %v3466_v63 }
 0x204   :  { %2534 = vmatpush1.bf16.msra.mxu0 %v3464_v62 }
 0x205   :  { %2535 = vmatprep.subr.bf16.mxu0 %v3469_v0 }
 0x208   :  { %2536 = vmatpush1.bf16.msra.mxu0 %v3467_v1 }
 0x209   :  { %2537 = vmatprep.subr.bf16.mxu0 %v3472_v2 }
 0x20c   :  { %2538 = vmatpush1.bf16.msra.mxu0 %v3470_v3 }
 0x20d   :  { %2539 = vmatprep.subr.bf16.mxu0 %v3475_v4 }
 0x210   :  { %2540 = vmatpush1.bf16.msra.mxu0 %v3473_v5 }
 0x211   :  { %2541 = vmatprep.subr.bf16.mxu0 %v3478_v6 }
 0x214   :  { %2542 = vmatpush1.bf16.msra.mxu0 %v3476_v7 }
 0x24c   :  { %v2051_v13 = vpop.f32.mrb[4].mxu1 }
 0x24d   :  { %v2951_v14 = vadd.f32 %v2051_v13, %v441_v11  ;;  %v2053_v15 = vpop.f32.mrb[5].mxu1 }
 0x24e   :  { %v2952_v16 = vadd.f32 %v2053_v15, %v445_v12  ;;  %v2055_v17 = vpop.f32.mrb[6].mxu1 }
 0x24f   :  { %vm2060_vm2 = vcmp.gt.f32.partialorder %v2951_v14, 0.0  ;;  %v2064_v18 = vmul.f32 0.2, %v2951_v14  ;;  %v2056_v19 = vpop.f32.mrb[7].mxu1 }
 0x250   :  { %vm2061_vm3 = vcmp.gt.f32.partialorder %v2952_v16, 0.0  ;;  %v2065_v20 = vmul.f32 0.2, %v2952_v16 }
 0x251   :  { %v2068_v21 = vsel %vm2060_vm2, %v2951_v14, %v2064_v18 }
 0x252   :  { %v2069_v27 = vsel %vm2061_vm3, %v2952_v16, %v2065_v20  ;;  %v2072_v29 = vpack.c.bf16 %v2068_v21, %v2068_v21 }
 0x253   :  { %v2073_v28 = vpack.c.bf16 %v2069_v27, %v2069_v27 }
 0x255   :  { %2543 = vmatprep.mubr.bf16.mxu0 %v2073_v28 }
 0x256   :  { %2544 = vmatmul.mubr.bf16.vlgmr.msra.gmra.mrb[4].mxu0 %v2072_v29 }
 0x329   :  { %v2545_v31 = vpop.f32.mrb[4].mxu0 }
 0x32a   :  { %v2953_v32 = vadd.f32 %v2545_v31, %v2143_v24  ;;  %v2547_v33 = vpop.f32.mrb[5].mxu0 }
 0x32b   :  { %v2954_v34 = vadd.f32 %v2547_v33, %v2147_v30  ;;  %v2549_v35 = vpop.f32.mrb[6].mxu0 }
 0x32c   :  { %vm2552_vm4 = vcmp.gt.f32.partialorder %v2953_v32, 0.0  ;;  %v2554_v38 = vmul.f32 0.2, %v2953_v32  ;;  %v2550_v39 = vpop.f32.mrb[7].mxu0 }
 0x32d   :  { %vm2553_vm5 = vcmp.gt.f32.partialorder %v2954_v34, 0.0  ;;  %v2555_v41 = vmul.f32 0.2, %v2954_v34 }
 0x32e   :  { %v2556_v42 = vsel %vm2552_vm4, %v2953_v32, %v2554_v38 }
 0x32f   :  { %v2557_v43 = vsel %vm2553_vm5, %v2954_v34, %v2555_v41  ;;  %v2570_v44 = vmul.f32 %v2563_v37, %v2556_v42 }
 0x330   :  { %v2571_v45 = vmul.f32 %v2567_v40, %v2557_v43 }
 0x332   :  { %v2572_v47 = vadd.f32 %v2571_v45, %v2570_v44 }
 0x334   :  { %2573 = vadd.xlane.f32.xlu0 %v2572_v47 }
 0x3c1   :  { %v2574_v22 = vpop.xlane.xlu0 %2573 }
 0x3c2   :  { %v2577_v52 = vadd.f32 %v2576_v49, %v2574_v22 }
 0x3c4   :  { %v2578_v23 = vsub.f32 0.0, %v2577_v52 }
 0x3c6   :  { %v2579_v54 = vmul.f32 1.442695, %v2578_v23 }
 0x3c8   :  { %3479 = vpow2.f32 %v2579_v54 }
 0x3d2   :  { %v3480_v48 = vpop.eup %3479 }
 0x3d3   :  { %v2581_v51 = vadd.f32 1.0, %v3480_v48 }
 0x3d5   :  { %3481 = vrcp.f32 %v2581_v51 }
 0x3df   :  { %v3482_v26 = vpop.eup %3481 }
 0x3e0   :  { %2585 = vst.msk [vmem:[#allocation8] sm:$0xff] %vm2584_vm6, %v3482_v26 }
 0x3e7   :  { %v2603_v55 = vld [vmem:[#allocation8] sm:$0x3] }
 0x3e8   :  { %2604 = vst [vmem:[%s3744_s7] sm:$0x3] %v2603_v55 }
 0x3e9   :  { %2621 = vsyncpa [#allocation4], 1 }
 0x3ea   :  { %2622 = vsyncpa [#allocation6], 1 }

</bundles_post_ra>
